<compile_context>
chip_gen: v5e
topology: v5e:2x2
jax: 0.10.0
libtpu: 0.0.40
codegen_flags: <defaults>
</compile_context>

<pallas_src>
import math

import jax
import jax.numpy as jnp
from jax.experimental import pallas as pl
from jax.experimental.pallas import tpu as pltpu

_LOG2 = math.log(2.0)
_MM_DTYPE = jnp.bfloat16          # MXU operand dtype (f32 accumulation)


def _ssp(x):
    """ShiftedSoftplus: softplus(x) - log(2), numerically stable."""
    return jnp.maximum(x, 0.0) + jnp.log1p(jnp.exp(-jnp.abs(x))) - _LOG2


def _mxu_dot(a, b):
    """bf16 x bf16 -> f32 matmul (MXU fast path, f32 accumulation)."""
    return jnp.dot(a.astype(_MM_DTYPE), b.astype(_MM_DTYPE),
                   preferred_element_type=jnp.float32)


# ------------------------------ Pallas kernel -------------------------------

def schnet_kernel(src_ref, dst_ref,                        # scalar prefetch (SMEM)
                  zz_ref, tfeat_ref, eattr_ref, cenv_ref,  # resident inputs
                  em_w1_ref, em_b1_ref, em_w2_ref, em_b2_ref,
                  c1_n1_ref, c1_n2w_ref, c1_n2b_ref,
                  c2_n1_ref, c2_n2w_ref, c2_n2b_ref,
                  lin_w_ref, lin_b_ref, tp_w_ref, tp_b_ref,
                  out_ref,                                  # running node state
                  w_scr, x1_scr, agg_scr):                  # VMEM scratch
    blk = pl.program_id(0)
    n_edges = w_scr.shape[0]

    @pl.when(blk == 0)
    def _init():
        out_ref[...] = zz_ref[...]

    x_in = out_ref[...]                                     # [N, H] f32

    # Per-block edge filter shared by conv1/conv2:
    #   W = edge_mlp(edge_attr) * C(edge_length)            [E, F]
    h = _ssp(_mxu_dot(eattr_ref[...], em_w1_ref[...]) + em_b1_ref[...])
    w_scr[...] = (_mxu_dot(h, em_w2_ref[...]) + em_b2_ref[...]) * cenv_ref[...]

    def cfconv(x, n1w_ref, n2w_ref, n2b_ref):
        # node_mlp1
        x1_scr[...] = _mxu_dot(x, n1w_ref[...])             # [N, F]
        agg_scr[...] = jnp.zeros_like(agg_scr)

        # gather x_j, message x_j * W, scatter-add at dst (index based, O(E*F))
        def edge_body(e, carry):
            s = src_ref[e]
            d = dst_ref[e]
            msg = x1_scr[pl.ds(s, 1), :] * w_scr[pl.ds(e, 1), :]
            agg_scr[pl.ds(d, 1), :] = agg_scr[pl.ds(d, 1), :] + msg
            return carry

        jax.lax.fori_loop(0, n_edges, edge_body, 0)

        # node_mlp2
        return _mxu_dot(agg_scr[...], n2w_ref[...]) + n2b_ref[...]

    # conv1
    x = cfconv(x_in, c1_n1_ref, c1_n2w_ref, c1_n2b_ref)
    # time-embedding projection (sin/cos/SiLU features precomputed outside)
    temb = _mxu_dot(tfeat_ref[...], tp_w_ref[...]) + tp_b_ref[...]
    x = _ssp(x + temb)
    # conv2
    x = cfconv(x, c2_n1_ref, c2_n2w_ref, c2_n2b_ref)
    x = _ssp(x)
    x = _ssp(_mxu_dot(x, lin_w_ref[...]) + lin_b_ref[...])

    # SchNetEncoder residual: zz <- zz + interaction(zz)
    out_ref[...] = x_in + x


# ------------------------- block-invariant precompute ------------------------

def _cutoff_envelope(edge_length, cutoff, smooth):
    if smooth:
        C = 0.5 * (jnp.cos(edge_length * math.pi / cutoff) + 1.0)
        C = C * (edge_length <= cutoff) * (edge_length >= 0.0)
        return C.astype(jnp.float32)
    return (edge_length <= cutoff).astype(jnp.float32)


def _time_features(tt, emb_dim):
    """SiLU(cat(sin, cos)(tt * freqs)) — block-invariant part of TimeEmbedding."""
    half = emb_dim // 2
    freqs = jnp.exp(jnp.arange(half, dtype=jnp.float32)
                    * (-math.log(1000.0) / (half - 1)))
    emb = tt.astype(jnp.float32) * freqs[None, :]
    emb = jnp.concatenate([jnp.sin(emb), jnp.cos(emb)], axis=-1)
    if emb_dim % 2 == 1:
        emb = jnp.pad(emb, ((0, 0), (0, 1)))   # TODO(synk): odd emb_dim branch not exercised
    return emb * jax.nn.sigmoid(emb)


# --------------------------------- wrapper -----------------------------------

def schnet_encoder_forward(zz, tt, edge_index, edge_length, edge_attr,
                           stacked_params, *, cutoff, smooth, time_channels):
    N, H = zz.shape
    E = edge_index.shape[1]
    num_blocks = stacked_params[0].shape[0]
    F = stacked_params[4].shape[2]             # c1_n1: [nb, H, F]

    src = edge_index[0].astype(jnp.int32)
    dst = edge_index[1].astype(jnp.int32)

    # Block-invariant precompute (done once, outside the kernel).
    cenv = _cutoff_envelope(edge_length, cutoff, smooth)            # [E, 1]
    tfeat = _time_features(tt, time_channels)                       # [N, Tc]

    # Pad the edge-feature contraction dim to a lane-dense multiple of 128.
    ce = edge_attr.shape[1]
    ce_pad = ((ce + 127) // 128) * 128
    eattr = jnp.pad(edge_attr, ((0, 0), (0, ce_pad - ce)))
    params = list(stacked_params)
    params[0] = jnp.pad(params[0], ((0, 0), (0, ce_pad - ce), (0, 0)))  # em_w1

    def invariant(b, *prefetch):          # resident across all blocks
        return (0, 0)

    def per_block(b, *prefetch):          # streamed per interaction block
        return (b, 0, 0)

    in_specs = [
        pl.BlockSpec((N, H), invariant),                 # zz
        pl.BlockSpec((N, time_channels), invariant),     # time features
        pl.BlockSpec((E, ce_pad), invariant),            # edge_attr (padded)
        pl.BlockSpec((E, 1), invariant),                 # cutoff envelope
    ] + [pl.BlockSpec((None,) + tuple(p.shape[1:]), per_block) for p in params]

    grid_spec = pltpu.PrefetchScalarGridSpec(
        num_scalar_prefetch=2,                           # src, dst -> SMEM
        grid=(num_blocks,),
        in_specs=in_specs,
        out_specs=pl.BlockSpec((N, H), invariant),
        scratch_shapes=[pltpu.VMEM((E, F), jnp.float32),   # edge filter W
                        pltpu.VMEM((N, F), jnp.float32),   # node_mlp1 output
                        pltpu.VMEM((N, F), jnp.float32)],  # scatter accumulator
    )

    # TODO(synk): input_output_aliases for zz<->out (saves one [N,H] HBM buffer)
    # omitted pending verification of the alias index convention together with
    # scalar-prefetch operands; node-axis tiling for graphs that exceed VMEM is
    # also left for a follow-up (would need edge tiling of the scatter loop).
    return pl.pallas_call(
        schnet_kernel,
        out_shape=jax.ShapeDtypeStruct((N, H), jnp.float32),
        grid_spec=grid_spec,
        compiler_params=pltpu.CompilerParams(
            dimension_semantics=("arbitrary",),   # residual carries sequentially
            vmem_limit_bytes=64 * 1024 * 1024,    # re-derived ceiling (v7x physical)
        ),
    )(src, dst, zz, tfeat, eattr, cenv, *params)


# --------------------------- parameter construction --------------------------

def init_linear(key, fan_in, fan_out, *, bias=True, xavier=False, zero_bias=False):
    kw, kb = jax.random.split(key)
    bound = math.sqrt(6.0 / (fan_in + fan_out)) if xavier else math.sqrt(1.0 / fan_in)
    w = jax.random.uniform(kw, (fan_in, fan_out), jnp.float32, -bound, bound)
    if not bias:
        return (w,)
    if zero_bias:
        b = jnp.zeros((1, fan_out), jnp.float32)
    else:
        b = jax.random.uniform(kb, (1, fan_out), jnp.float32, -bound, bound)
    return (w, b)


def make_block_params(key, hidden, edge_channels, num_filters, time_channels):
    ks = jax.random.split(key, 8)
    em_w1, em_b1 = init_linear(ks[0], edge_channels, num_filters)
    em_w2, em_b2 = init_linear(ks[1], num_filters, num_filters)
    (c1_n1,) = init_linear(ks[2], hidden, num_filters, bias=False, xavier=True)
    c1_n2w, c1_n2b = init_linear(ks[3], num_filters, hidden, xavier=True, zero_bias=True)
    (c2_n1,) = init_linear(ks[4], hidden, num_filters, bias=False, xavier=True)
    c2_n2w, c2_n2b = init_linear(ks[5], num_filters, hidden, xavier=True, zero_bias=True)
    lin_w, lin_b = init_linear(ks[6], hidden, hidden)
    tp_w, tp_b = init_linear(ks[7], time_channels, hidden)
    return (em_w1, em_b1, em_w2, em_b2, c1_n1, c1_n2w, c1_n2b,
            c2_n1, c2_n2w, c2_n2b, lin_w, lin_b, tp_w, tp_b)


_WEIGHT_SLOTS = (0, 2, 4, 5, 7, 8, 10, 12)   # weight matrices -> bf16; biases stay f32


def stack_block_params(block_params):
    n = len(block_params[0])
    stacked = [jnp.stack([bp[i] for bp in block_params]) for i in range(n)]
    return tuple(p.astype(_MM_DTYPE) if i in _WEIGHT_SLOTS else p
                 for i, p in enumerate(stacked))


# ------------------------------ pure-JAX reference ---------------------------

def ref_forward(zz, tt, edge_index, edge_length, edge_attr, stacked_params,
                *, cutoff, smooth, time_channels):
    N = zz.shape[0]
    src, dst = edge_index[0], edge_index[1]
    cenv = _cutoff_envelope(edge_length, cutoff, smooth)
    tfeat = _time_features(tt, time_channels)
    num_blocks = stacked_params[0].shape[0]

    x = zz
    for b in range(num_blocks):
        (em_w1, em_b1, em_w2, em_b2, c1_n1, c1_n2w, c1_n2b,
         c2_n1, c2_n2w, c2_n2b, lin_w, lin_b, tp_w, tp_b) = \
            [p[b] for p in stacked_params]

        W = (_mxu_dot(_ssp(_mxu_dot(edge_attr, em_w1) + em_b1), em_w2) + em_b2) * cenv

        def cf(h, n1, n2w, n2b):
            h1 = _mxu_dot(h, n1)
            msg = h1[src] * W
            agg = jax.ops.segment_sum(msg, dst, num_segments=N)
            return _mxu_dot(agg, n2w) + n2b

        y = cf(x, c1_n1, c1_n2w, c1_n2b)
        y = _ssp(y + _mxu_dot(tfeat, tp_w) + tp_b)
        y = cf(y, c2_n1, c2_n2w, c2_n2b)
        y = _ssp(y)
        y = _ssp(_mxu_dot(y, lin_w) + lin_b)
        x = x + y
    return x


# ------------------------------------ main -----------------------------------

if __name__ == "__main__":
    key = jax.random.PRNGKey(0)

    # Small but lane-dense shapes (SchNet defaults: hidden=128, num_filters=hidden).
    N, E = 64, 128
    hidden = 128
    num_filters = hidden
    edge_channels = 100            # PyTorch default; zero-padded to 128 in the wrapper
    time_channels = 128
    num_interactions = 2
    cutoff, smooth = 10.0, False

    k1, k2, k3, k4, k5, kp = jax.random.split(key, 6)
    zz = jax.random.normal(k1, (N, hidden), jnp.float32)
    tt = jax.random.uniform(k2, (N, 1), jnp.float32)
    edge_index = jax.random.randint(k3, (2, E), 0, N, dtype=jnp.int32)
    edge_length = jax.random.uniform(k4, (E, 1), jnp.float32, 0.0, 15.0)  # some > cutoff
    edge_attr = jax.random.normal(k5, (E, edge_channels), jnp.float32)

    block_params = [
        make_block_params(k, hidden, edge_channels, num_filters, time_channels)
        for k in jax.random.split(kp, num_interactions)
    ]
    stacked = stack_block_params(block_params)

    out = schnet_encoder_forward(zz, tt, edge_index, edge_length, edge_attr, stacked,
                                 cutoff=cutoff, smooth=smooth,
                                 time_channels=time_channels)
    out = jax.block_until_ready(out)

    ref = ref_forward(zz, tt, edge_index, edge_length, edge_attr, stacked,
                      cutoff=cutoff, smooth=smooth, time_channels=time_channels)
    ref = jax.block_until_ready(ref)

    # Kernel and reference use identical bf16-operand / f32-accumulate matmuls;
    # residual differences come only from accumulation order (MXU tiling,
    # segment_sum vs. sequential scatter) and bf16 rounding of intermediates.
    assert out.shape == ref.shape
    assert jnp.allclose(out, ref, atol=1e-2, rtol=1e-2), \
        f"max abs err {jnp.max(jnp.abs(out - ref))}"
    print("KERNEL_OK")
</pallas_src>

<mosaic_0001>
module attributes {stable_mosaic.version = 11 : i64} {
  func.func @schnet_kernel(%arg0: i32, %arg1: memref<128xi32, #tpu.memory_space<smem>>, %arg2: memref<128xi32, #tpu.memory_space<smem>>, %arg3: memref<64x128xf32, #tpu.memory_space<vmem>>, %arg4: memref<64x128xf32, #tpu.memory_space<vmem>>, %arg5: memref<128x128xf32, #tpu.memory_space<vmem>>, %arg6: memref<128x1xf32, #tpu.memory_space<vmem>>, %arg7: memref<1x128x128xbf16, #tpu.memory_space<vmem>>, %arg8: memref<1x1x128xf32, #tpu.memory_space<vmem>>, %arg9: memref<1x128x128xbf16, #tpu.memory_space<vmem>>, %arg10: memref<1x1x128xf32, #tpu.memory_space<vmem>>, %arg11: memref<1x128x128xbf16, #tpu.memory_space<vmem>>, %arg12: memref<1x128x128xbf16, #tpu.memory_space<vmem>>, %arg13: memref<1x1x128xf32, #tpu.memory_space<vmem>>, %arg14: memref<1x128x128xbf16, #tpu.memory_space<vmem>>, %arg15: memref<1x128x128xbf16, #tpu.memory_space<vmem>>, %arg16: memref<1x1x128xf32, #tpu.memory_space<vmem>>, %arg17: memref<1x128x128xbf16, #tpu.memory_space<vmem>>, %arg18: memref<1x1x128xf32, #tpu.memory_space<vmem>>, %arg19: memref<1x128x128xbf16, #tpu.memory_space<vmem>>, %arg20: memref<1x1x128xf32, #tpu.memory_space<vmem>>, %arg21: memref<64x128xf32, #tpu.memory_space<vmem>>, %arg22: memref<128x128xf32, #tpu.memory_space<vmem>>, %arg23: memref<64x128xf32, #tpu.memory_space<vmem>>, %arg24: memref<64x128xf32, #tpu.memory_space<vmem>>) attributes {dimension_semantics = [#tpu.dimension_semantics<arbitrary>], iteration_bounds = array<i64: 2>, scalar_prefetch = 2 : i64, scratch_operands = 3 : i64, tpu.core_type = #tpu.core_type<tc>, window_params = [{pipeline_mode = #tpu.pipeline_mode<synchronous>, transform_indices = @transform_0, window_bounds = array<i64: 64, 128>}, {pipeline_mode = #tpu.pipeline_mode<synchronous>, transform_indices = @transform_1, window_bounds = array<i64: 64, 128>}, {pipeline_mode = #tpu.pipeline_mode<synchronous>, transform_indices = @transform_2, window_bounds = array<i64: 128, 128>}, {pipeline_mode = #tpu.pipeline_mode<synchronous>, transform_indices = @transform_3, window_bounds = array<i64: 128, 1>}, {transform_indices = @transform_4, window_bounds = array<i64: 1, 128, 128>}, {transform_indices = @transform_5, window_bounds = array<i64: 1, 1, 128>}, {transform_indices = @transform_6, window_bounds = array<i64: 1, 128, 128>}, {transform_indices = @transform_7, window_bounds = array<i64: 1, 1, 128>}, {transform_indices = @transform_8, window_bounds = array<i64: 1, 128, 128>}, {transform_indices = @transform_9, window_bounds = array<i64: 1, 128, 128>}, {transform_indices = @transform_10, window_bounds = array<i64: 1, 1, 128>}, {transform_indices = @transform_11, window_bounds = array<i64: 1, 128, 128>}, {transform_indices = @transform_12, window_bounds = array<i64: 1, 128, 128>}, {transform_indices = @transform_13, window_bounds = array<i64: 1, 1, 128>}, {transform_indices = @transform_14, window_bounds = array<i64: 1, 128, 128>}, {transform_indices = @transform_15, window_bounds = array<i64: 1, 1, 128>}, {transform_indices = @transform_16, window_bounds = array<i64: 1, 128, 128>}, {transform_indices = @transform_17, window_bounds = array<i64: 1, 1, 128>}, {pipeline_mode = #tpu.pipeline_mode<synchronous>, transform_indices = @transform_18, window_bounds = array<i64: 64, 128>}]} {
    %c0_i32 = arith.constant 0 : i32
    %0 = arith.cmpi eq, %arg0, %c0_i32 : i32
    %1 = arith.extui %0 : i1 to i32
    %c0_i32_0 = arith.constant 0 : i32
    %2 = arith.cmpi ne, %1, %c0_i32_0 : i32
    scf.if %2 {
      %c0_93 = arith.constant 0 : index
      %c0_94 = arith.constant 0 : index
      %119 = vector.load %arg3[%c0_93, %c0_94] : memref<64x128xf32, #tpu.memory_space<vmem>>, vector<64x128xf32>
      %c0_95 = arith.constant 0 : index
      %c0_96 = arith.constant 0 : index
      %120 = vector.load %arg21[%c0_95, %c0_96] : memref<64x128xf32, #tpu.memory_space<vmem>>, vector<64x128xf32>
      tpu.vector_store %arg21[%c0_95, %c0_96], %119 {strides = array<i32>} : memref<64x128xf32, #tpu.memory_space<vmem>>, vector<64x128xf32>,
    } else {
    }
    %c0 = arith.constant 0 : index
    %c0_1 = arith.constant 0 : index
    %3 = vector.load %arg21[%c0, %c0_1] : memref<64x128xf32, #tpu.memory_space<vmem>>, vector<64x128xf32>
    %c0_2 = arith.constant 0 : index
    %c0_3 = arith.constant 0 : index
    %4 = vector.load %arg5[%c0_2, %c0_3] : memref<128x128xf32, #tpu.memory_space<vmem>>, vector<128x128xf32>
    %c0_4 = arith.constant 0 : index
    %c0_5 = arith.constant 0 : index
    %c0_6 = arith.constant 0 : index
    %5 = vector.load %arg7[%c0_4, %c0_5, %c0_6] : memref<1x128x128xbf16, #tpu.memory_space<vmem>>, vector<1x128x128xbf16>
    %6 = vector.shape_cast %5 : vector<1x128x128xbf16> to vector<128x128xbf16>
    %7 = arith.truncf %4 : vector<128x128xf32> to vector<128x128xbf16>
    %cst = arith.constant dense<0.000000e+00> : vector<128x128xf32>
    %8 = tpu.matmul %7, %6, %cst {dimension_numbers = #tpu.dot_dimension_numbers<[1], [0], [0], [1], [0, 0, 1, 1], [], []>} : vector<128x128xbf16>, vector<128x128xbf16>, vector<128x128xf32> -> vector<128x128xf32>
    %c0_7 = arith.constant 0 : index
    %c0_8 = arith.constant 0 : index
    %c0_9 = arith.constant 0 : index
    %9 = vector.load %arg8[%c0_7, %c0_8, %c0_9] : memref<1x1x128xf32, #tpu.memory_space<vmem>>, vector<1x1x128xf32>
    %10 = vector.shape_cast %9 : vector<1x1x128xf32> to vector<1x128xf32>
    %11 = vector.broadcast %10 : vector<1x128xf32> to vector<128x128xf32>
    %12 = arith.addf %8, %11 : vector<128x128xf32>
    %cst_10 = arith.constant 0.000000e+00 : f32
    %13 = vector.broadcast %cst_10 : f32 to vector<128x128xf32>
    %14 = arith.maximumf %12, %13 : vector<128x128xf32>
    %15 = math.absf %12 : vector<128x128xf32>
    %cst_11 = arith.constant 0.000000e+00 : f32
    %16 = vector.broadcast %cst_11 : f32 to vector<128x128xf32>
    %17 = arith.subf %16, %15 : vector<128x128xf32>
    %18 = math.exp %17 : vector<128x128xf32>
    %19 = math.log1p %18 : vector<128x128xf32>
    %20 = arith.addf %14, %19 : vector<128x128xf32>
    %cst_12 = arith.constant 0.693147182 : f32
    %21 = vector.broadcast %cst_12 : f32 to vector<128x128xf32>
    %22 = arith.subf %20, %21 : vector<128x128xf32>
    %c0_13 = arith.constant 0 : index
    %c0_14 = arith.constant 0 : index
    %c0_15 = arith.constant 0 : index
    %23 = vector.load %arg9[%c0_13, %c0_14, %c0_15] : memref<1x128x128xbf16, #tpu.memory_space<vmem>>, vector<1x128x128xbf16>
    %24 = vector.shape_cast %23 : vector<1x128x128xbf16> to vector<128x128xbf16>
    %25 = arith.truncf %22 : vector<128x128xf32> to vector<128x128xbf16>
    %cst_16 = arith.constant dense<0.000000e+00> : vector<128x128xf32>
    %26 = tpu.matmul %25, %24, %cst_16 {dimension_numbers = #tpu.dot_dimension_numbers<[1], [0], [0], [1], [0, 0, 1, 1], [], []>} : vector<128x128xbf16>, vector<128x128xbf16>, vector<128x128xf32> -> vector<128x128xf32>
    %c0_17 = arith.constant 0 : index
    %c0_18 = arith.constant 0 : index
    %c0_19 = arith.constant 0 : index
    %27 = vector.load %arg10[%c0_17, %c0_18, %c0_19] : memref<1x1x128xf32, #tpu.memory_space<vmem>>, vector<1x1x128xf32>
    %28 = vector.shape_cast %27 : vector<1x1x128xf32> to vector<1x128xf32>
    %29 = vector.broadcast %28 : vector<1x128xf32> to vector<128x128xf32>
    %30 = arith.addf %26, %29 : vector<128x128xf32>
    %c0_20 = arith.constant 0 : index
    %c0_21 = arith.constant 0 : index
    %31 = vector.load %arg6[%c0_20, %c0_21] : memref<128x1xf32, #tpu.memory_space<vmem>>, vector<128x1xf32>
    %32 = vector.broadcast %31 : vector<128x1xf32> to vector<128x128xf32>
    %33 = arith.mulf %30, %32 : vector<128x128xf32>
    %c0_22 = arith.constant 0 : index
    %c0_23 = arith.constant 0 : index
    %34 = vector.load %arg22[%c0_22, %c0_23] : memref<128x128xf32, #tpu.memory_space<vmem>>, vector<128x128xf32>
    tpu.vector_store %arg22[%c0_22, %c0_23], %33 {strides = array<i32>} : memref<128x128xf32, #tpu.memory_space<vmem>>, vector<128x128xf32>,
    %c0_24 = arith.constant 0 : index
    %c0_25 = arith.constant 0 : index
    %c0_26 = arith.constant 0 : index
    %35 = vector.load %arg11[%c0_24, %c0_25, %c0_26] : memref<1x128x128xbf16, #tpu.memory_space<vmem>>, vector<1x128x128xbf16>
    %36 = vector.shape_cast %35 : vector<1x128x128xbf16> to vector<128x128xbf16>
    %37 = arith.truncf %3 : vector<64x128xf32> to vector<64x128xbf16>
    %cst_27 = arith.constant dense<0.000000e+00> : vector<64x128xf32>
    %38 = tpu.matmul %37, %36, %cst_27 {dimension_numbers = #tpu.dot_dimension_numbers<[1], [0], [0], [1], [0, 0, 1, 1], [], []>} : vector<64x128xbf16>, vector<128x128xbf16>, vector<64x128xf32> -> vector<64x128xf32>
    %c0_28 = arith.constant 0 : index
    %c0_29 = arith.constant 0 : index
    %39 = vector.load %arg23[%c0_28, %c0_29] : memref<64x128xf32, #tpu.memory_space<vmem>>, vector<64x128xf32>
    tpu.vector_store %arg23[%c0_28, %c0_29], %38 {strides = array<i32>} : memref<64x128xf32, #tpu.memory_space<vmem>>, vector<64x128xf32>,
    %cst_30 = arith.constant 0.000000e+00 : f32
    %40 = vector.broadcast %cst_30 : f32 to vector<64x128xf32>
    %c0_31 = arith.constant 0 : index
    %c0_32 = arith.constant 0 : index
    %41 = vector.load %arg24[%c0_31, %c0_32] : memref<64x128xf32, #tpu.memory_space<vmem>>, vector<64x128xf32>
    tpu.vector_store %arg24[%c0_31, %c0_32], %40 {strides = array<i32>} : memref<64x128xf32, #tpu.memory_space<vmem>>, vector<64x128xf32>,
    %c0_i32_33 = arith.constant 0 : i32
    %c128_i32 = arith.constant 128 : i32
    %42 = arith.addi %c0_i32_33, %c128_i32 : i32
    %c1_i32 = arith.constant 1 : i32
    scf.for %arg25 = %c0_i32_33 to %42 step %c1_i32  : i32 {
      %119 = arith.index_cast %arg25 : i32 to index
      %120 = memref.load %arg1[%119] : memref<128xi32, #tpu.memory_space<smem>>
      %121 = arith.index_cast %arg25 : i32 to index
      %122 = memref.load %arg2[%121] : memref<128xi32, #tpu.memory_space<smem>>
      %123 = arith.index_cast %120 : i32 to index
      %c0_93 = arith.constant 0 : index
      %124 = vector.load %arg23[%123, %c0_93] : memref<64x128xf32, #tpu.memory_space<vmem>>, vector<1x128xf32>
      %125 = arith.index_cast %arg25 : i32 to index
      %c0_94 = arith.constant 0 : index
      %126 = vector.load %arg22[%125, %c0_94] : memref<128x128xf32, #tpu.memory_space<vmem>>, vector<1x128xf32>
      %127 = arith.mulf %124, %126 : vector<1x128xf32>
      %128 = arith.index_cast %122 : i32 to index
      %c0_95 = arith.constant 0 : index
      %129 = vector.load %arg24[%128, %c0_95] : memref<64x128xf32, #tpu.memory_space<vmem>>, vector<1x128xf32>
      %130 = arith.addf %129, %127 : vector<1x128xf32>
      %131 = arith.index_cast %122 : i32 to index
      %c0_96 = arith.constant 0 : index
      %132 = vector.load %arg24[%131, %c0_96] : memref<64x128xf32, #tpu.memory_space<vmem>>, vector<1x128xf32>
      tpu.vector_store %arg24[%131, %c0_96], %130 {strides = array<i32>} : memref<64x128xf32, #tpu.memory_space<vmem>>, vector<1x128xf32>,
    }
    %c128_i32_34 = arith.constant 128 : i32
    %c0_35 = arith.constant 0 : index
    %c0_36 = arith.constant 0 : index
    %43 = vector.load %arg24[%c0_35, %c0_36] : memref<64x128xf32, #tpu.memory_space<vmem>>, vector<64x128xf32>
    %c0_37 = arith.constant 0 : index
    %c0_38 = arith.constant 0 : index
    %c0_39 = arith.constant 0 : index
    %44 = vector.load %arg12[%c0_37, %c0_38, %c0_39] : memref<1x128x128xbf16, #tpu.memory_space<vmem>>, vector<1x128x128xbf16>
    %45 = vector.shape_cast %44 : vector<1x128x128xbf16> to vector<128x128xbf16>
    %46 = arith.truncf %43 : vector<64x128xf32> to vector<64x128xbf16>
    %cst_40 = arith.constant dense<0.000000e+00> : vector<64x128xf32>
    %47 = tpu.matmul %46, %45, %cst_40 {dimension_numbers = #tpu.dot_dimension_numbers<[1], [0], [0], [1], [0, 0, 1, 1], [], []>} : vector<64x128xbf16>, vector<128x128xbf16>, vector<64x128xf32> -> vector<64x128xf32>
    %c0_41 = arith.constant 0 : index
    %c0_42 = arith.constant 0 : index
    %c0_43 = arith.constant 0 : index
    %48 = vector.load %arg13[%c0_41, %c0_42, %c0_43] : memref<1x1x128xf32, #tpu.memory_space<vmem>>, vector<1x1x128xf32>
    %49 = vector.shape_cast %48 : vector<1x1x128xf32> to vector<1x128xf32>
    %50 = vector.broadcast %49 : vector<1x128xf32> to vector<64x128xf32>
    %51 = arith.addf %47, %50 : vector<64x128xf32>
    %c0_44 = arith.constant 0 : index
    %c0_45 = arith.constant 0 : index
    %52 = vector.load %arg4[%c0_44, %c0_45] : memref<64x128xf32, #tpu.memory_space<vmem>>, vector<64x128xf32>
    %c0_46 = arith.constant 0 : index
    %c0_47 = arith.constant 0 : index
    %c0_48 = arith.constant 0 : index
    %53 = vector.load %arg19[%c0_46, %c0_47, %c0_48] : memref<1x128x128xbf16, #tpu.memory_space<vmem>>, vector<1x128x128xbf16>
    %54 = vector.shape_cast %53 : vector<1x128x128xbf16> to vector<128x128xbf16>
    %55 = arith.truncf %52 : vector<64x128xf32> to vector<64x128xbf16>
    %cst_49 = arith.constant dense<0.000000e+00> : vector<64x128xf32>
    %56 = tpu.matmul %55, %54, %cst_49 {dimension_numbers = #tpu.dot_dimension_numbers<[1], [0], [0], [1], [0, 0, 1, 1], [], []>} : vector<64x128xbf16>, vector<128x128xbf16>, vector<64x128xf32> -> vector<64x128xf32>
    %c0_50 = arith.constant 0 : index
    %c0_51 = arith.constant 0 : index
    %c0_52 = arith.constant 0 : index
    %57 = vector.load %arg20[%c0_50, %c0_51, %c0_52] : memref<1x1x128xf32, #tpu.memory_space<vmem>>, vector<1x1x128xf32>
    %58 = vector.shape_cast %57 : vector<1x1x128xf32> to vector<1x128xf32>
    %59 = vector.broadcast %58 : vector<1x128xf32> to vector<64x128xf32>
    %60 = arith.addf %56, %59 : vector<64x128xf32>
    %61 = arith.addf %51, %60 : vector<64x128xf32>
    %cst_53 = arith.constant 0.000000e+00 : f32
    %62 = vector.broadcast %cst_53 : f32 to vector<64x128xf32>
    %63 = arith.maximumf %61, %62 : vector<64x128xf32>
    %64 = math.absf %61 : vector<64x128xf32>
    %cst_54 = arith.constant 0.000000e+00 : f32
    %65 = vector.broadcast %cst_54 : f32 to vector<64x128xf32>
    %66 = arith.subf %65, %64 : vector<64x128xf32>
    %67 = math.exp %66 : vector<64x128xf32>
    %68 = math.log1p %67 : vector<64x128xf32>
    %69 = arith.addf %63, %68 : vector<64x128xf32>
    %cst_55 = arith.constant 0.693147182 : f32
    %70 = vector.broadcast %cst_55 : f32 to vector<64x128xf32>
    %71 = arith.subf %69, %70 : vector<64x128xf32>
    %c0_56 = arith.constant 0 : index
    %c0_57 = arith.constant 0 : index
    %c0_58 = arith.constant 0 : index
    %72 = vector.load %arg14[%c0_56, %c0_57, %c0_58] : memref<1x128x128xbf16, #tpu.memory_space<vmem>>, vector<1x128x128xbf16>
    %73 = vector.shape_cast %72 : vector<1x128x128xbf16> to vector<128x128xbf16>
    %74 = arith.truncf %71 : vector<64x128xf32> to vector<64x128xbf16>
    %cst_59 = arith.constant dense<0.000000e+00> : vector<64x128xf32>
    %75 = tpu.matmul %74, %73, %cst_59 {dimension_numbers = #tpu.dot_dimension_numbers<[1], [0], [0], [1], [0, 0, 1, 1], [], []>} : vector<64x128xbf16>, vector<128x128xbf16>, vector<64x128xf32> -> vector<64x128xf32>
    %c0_60 = arith.constant 0 : index
    %c0_61 = arith.constant 0 : index
    %76 = vector.load %arg23[%c0_60, %c0_61] : memref<64x128xf32, #tpu.memory_space<vmem>>, vector<64x128xf32>
    tpu.vector_store %arg23[%c0_60, %c0_61], %75 {strides = array<i32>} : memref<64x128xf32, #tpu.memory_space<vmem>>, vector<64x128xf32>,
    %cst_62 = arith.constant 0.000000e+00 : f32
    %77 = vector.broadcast %cst_62 : f32 to vector<64x128xf32>
    %c0_63 = arith.constant 0 : index
    %c0_64 = arith.constant 0 : index
    %78 = vector.load %arg24[%c0_63, %c0_64] : memref<64x128xf32, #tpu.memory_space<vmem>>, vector<64x128xf32>
    tpu.vector_store %arg24[%c0_63, %c0_64], %77 {strides = array<i32>} : memref<64x128xf32, #tpu.memory_space<vmem>>, vector<64x128xf32>,
    %c0_i32_65 = arith.constant 0 : i32
    %c128_i32_66 = arith.constant 128 : i32
    %79 = arith.addi %c0_i32_65, %c128_i32_66 : i32
    %c1_i32_67 = arith.constant 1 : i32
    scf.for %arg25 = %c0_i32_65 to %79 step %c1_i32_67  : i32 {
      %119 = arith.index_cast %arg25 : i32 to index
      %120 = memref.load %arg1[%119] : memref<128xi32, #tpu.memory_space<smem>>
      %121 = arith.index_cast %arg25 : i32 to index
      %122 = memref.load %arg2[%121] : memref<128xi32, #tpu.memory_space<smem>>
      %123 = arith.index_cast %120 : i32 to index
      %c0_93 = arith.constant 0 : index
      %124 = vector.load %arg23[%123, %c0_93] : memref<64x128xf32, #tpu.memory_space<vmem>>, vector<1x128xf32>
      %125 = arith.index_cast %arg25 : i32 to index
      %c0_94 = arith.constant 0 : index
      %126 = vector.load %arg22[%125, %c0_94] : memref<128x128xf32, #tpu.memory_space<vmem>>, vector<1x128xf32>
      %127 = arith.mulf %124, %126 : vector<1x128xf32>
      %128 = arith.index_cast %122 : i32 to index
      %c0_95 = arith.constant 0 : index
      %129 = vector.load %arg24[%128, %c0_95] : memref<64x128xf32, #tpu.memory_space<vmem>>, vector<1x128xf32>
      %130 = arith.addf %129, %127 : vector<1x128xf32>
      %131 = arith.index_cast %122 : i32 to index
      %c0_96 = arith.constant 0 : index
      %132 = vector.load %arg24[%131, %c0_96] : memref<64x128xf32, #tpu.memory_space<vmem>>, vector<1x128xf32>
      tpu.vector_store %arg24[%131, %c0_96], %130 {strides = array<i32>} : memref<64x128xf32, #tpu.memory_space<vmem>>, vector<1x128xf32>,
    }
    %c128_i32_68 = arith.constant 128 : i32
    %c0_69 = arith.constant 0 : index
    %c0_70 = arith.constant 0 : index
    %80 = vector.load %arg24[%c0_69, %c0_70] : memref<64x128xf32, #tpu.memory_space<vmem>>, vector<64x128xf32>
    %c0_71 = arith.constant 0 : index
    %c0_72 = arith.constant 0 : index
    %c0_73 = arith.constant 0 : index
    %81 = vector.load %arg15[%c0_71, %c0_72, %c0_73] : memref<1x128x128xbf16, #tpu.memory_space<vmem>>, vector<1x128x128xbf16>
    %82 = vector.shape_cast %81 : vector<1x128x128xbf16> to vector<128x128xbf16>
    %83 = arith.truncf %80 : vector<64x128xf32> to vector<64x128xbf16>
    %cst_74 = arith.constant dense<0.000000e+00> : vector<64x128xf32>
    %84 = tpu.matmul %83, %82, %cst_74 {dimension_numbers = #tpu.dot_dimension_numbers<[1], [0], [0], [1], [0, 0, 1, 1], [], []>} : vector<64x128xbf16>, vector<128x128xbf16>, vector<64x128xf32> -> vector<64x128xf32>
    %c0_75 = arith.constant 0 : index
    %c0_76 = arith.constant 0 : index
    %c0_77 = arith.constant 0 : index
    %85 = vector.load %arg16[%c0_75, %c0_76, %c0_77] : memref<1x1x128xf32, #tpu.memory_space<vmem>>, vector<1x1x128xf32>
    %86 = vector.shape_cast %85 : vector<1x1x128xf32> to vector<1x128xf32>
    %87 = vector.broadcast %86 : vector<1x128xf32> to vector<64x128xf32>
    %88 = arith.addf %84, %87 : vector<64x128xf32>
    %cst_78 = arith.constant 0.000000e+00 : f32
    %89 = vector.broadcast %cst_78 : f32 to vector<64x128xf32>
    %90 = arith.maximumf %88, %89 : vector<64x128xf32>
    %91 = math.absf %88 : vector<64x128xf32>
    %cst_79 = arith.constant 0.000000e+00 : f32
    %92 = vector.broadcast %cst_79 : f32 to vector<64x128xf32>
    %93 = arith.subf %92, %91 : vector<64x128xf32>
    %94 = math.exp %93 : vector<64x128xf32>
    %95 = math.log1p %94 : vector<64x128xf32>
    %96 = arith.addf %90, %95 : vector<64x128xf32>
    %cst_80 = arith.constant 0.693147182 : f32
    %97 = vector.broadcast %cst_80 : f32 to vector<64x128xf32>
    %98 = arith.subf %96, %97 : vector<64x128xf32>
    %c0_81 = arith.constant 0 : index
    %c0_82 = arith.constant 0 : index
    %c0_83 = arith.constant 0 : index
    %99 = vector.load %arg17[%c0_81, %c0_82, %c0_83] : memref<1x128x128xbf16, #tpu.memory_space<vmem>>, vector<1x128x128xbf16>
    %100 = vector.shape_cast %99 : vector<1x128x128xbf16> to vector<128x128xbf16>
    %101 = arith.truncf %98 : vector<64x128xf32> to vector<64x128xbf16>
    %cst_84 = arith.constant dense<0.000000e+00> : vector<64x128xf32>
    %102 = tpu.matmul %101, %100, %cst_84 {dimension_numbers = #tpu.dot_dimension_numbers<[1], [0], [0], [1], [0, 0, 1, 1], [], []>} : vector<64x128xbf16>, vector<128x128xbf16>, vector<64x128xf32> -> vector<64x128xf32>
    %c0_85 = arith.constant 0 : index
    %c0_86 = arith.constant 0 : index
    %c0_87 = arith.constant 0 : index
    %103 = vector.load %arg18[%c0_85, %c0_86, %c0_87] : memref<1x1x128xf32, #tpu.memory_space<vmem>>, vector<1x1x128xf32>
    %104 = vector.shape_cast %103 : vector<1x1x128xf32> to vector<1x128xf32>
    %105 = vector.broadcast %104 : vector<1x128xf32> to vector<64x128xf32>
    %106 = arith.addf %102, %105 : vector<64x128xf32>
    %cst_88 = arith.constant 0.000000e+00 : f32
    %107 = vector.broadcast %cst_88 : f32 to vector<64x128xf32>
    %108 = arith.maximumf %106, %107 : vector<64x128xf32>
    %109 = math.absf %106 : vector<64x128xf32>
    %cst_89 = arith.constant 0.000000e+00 : f32
    %110 = vector.broadcast %cst_89 : f32 to vector<64x128xf32>
    %111 = arith.subf %110, %109 : vector<64x128xf32>
    %112 = math.exp %111 : vector<64x128xf32>
    %113 = math.log1p %112 : vector<64x128xf32>
    %114 = arith.addf %108, %113 : vector<64x128xf32>
    %cst_90 = arith.constant 0.693147182 : f32
    %115 = vector.broadcast %cst_90 : f32 to vector<64x128xf32>
    %116 = arith.subf %114, %115 : vector<64x128xf32>
    %117 = arith.addf %3, %116 : vector<64x128xf32>
    %c0_91 = arith.constant 0 : index
    %c0_92 = arith.constant 0 : index
    %118 = vector.load %arg21[%c0_91, %c0_92] : memref<64x128xf32, #tpu.memory_space<vmem>>, vector<64x128xf32>
    tpu.vector_store %arg21[%c0_91, %c0_92], %117 {strides = array<i32>} : memref<64x128xf32, #tpu.memory_space<vmem>>, vector<64x128xf32>,
    return
  }
  func.func @transform_0(%arg0: i32, %arg1: memref<128xi32, #tpu.memory_space<smem>>, %arg2: memref<128xi32, #tpu.memory_space<smem>>) -> (i32, i32) {
    %c0_i32 = arith.constant 0 : i32
    %c0_i32_0 = arith.constant 0 : i32
    %c0_i32_1 = arith.constant 0 : i32
    return %c0_i32, %c0_i32_0 : i32, i32
  }
  func.func @transform_1(%arg0: i32, %arg1: memref<128xi32, #tpu.memory_space<smem>>, %arg2: memref<128xi32, #tpu.memory_space<smem>>) -> (i32, i32) {
    %c0_i32 = arith.constant 0 : i32
    %c0_i32_0 = arith.constant 0 : i32
    %c0_i32_1 = arith.constant 0 : i32
    return %c0_i32, %c0_i32_0 : i32, i32
  }
  func.func @transform_2(%arg0: i32, %arg1: memref<128xi32, #tpu.memory_space<smem>>, %arg2: memref<128xi32, #tpu.memory_space<smem>>) -> (i32, i32) {
    %c0_i32 = arith.constant 0 : i32
    %c0_i32_0 = arith.constant 0 : i32
    %c0_i32_1 = arith.constant 0 : i32
    return %c0_i32, %c0_i32_0 : i32, i32
  }
  func.func @transform_3(%arg0: i32, %arg1: memref<128xi32, #tpu.memory_space<smem>>, %arg2: memref<128xi32, #tpu.memory_space<smem>>) -> (i32, i32) {
    %c0_i32 = arith.constant 0 : i32
    %c0_i32_0 = arith.constant 0 : i32
    %c0_i32_1 = arith.constant 0 : i32
    return %c0_i32, %c0_i32_0 : i32, i32
  }
  func.func @transform_4(%arg0: i32, %arg1: memref<128xi32, #tpu.memory_space<smem>>, %arg2: memref<128xi32, #tpu.memory_space<smem>>) -> (i32, i32, i32) {
    %c0_i32 = arith.constant 0 : i32
    %c0_i32_0 = arith.constant 0 : i32
    %c0_i32_1 = arith.constant 0 : i32
    return %arg0, %c0_i32, %c0_i32_0 : i32, i32, i32
  }
  func.func @transform_5(%arg0: i32, %arg1: memref<128xi32, #tpu.memory_space<smem>>, %arg2: memref<128xi32, #tpu.memory_space<smem>>) -> (i32, i32, i32) {
    %c0_i32 = arith.constant 0 : i32
    %c0_i32_0 = arith.constant 0 : i32
    %c0_i32_1 = arith.constant 0 : i32
    return %arg0, %c0_i32, %c0_i32_0 : i32, i32, i32
  }
  func.func @transform_6(%arg0: i32, %arg1: memref<128xi32, #tpu.memory_space<smem>>, %arg2: memref<128xi32, #tpu.memory_space<smem>>) -> (i32, i32, i32) {
    %c0_i32 = arith.constant 0 : i32
    %c0_i32_0 = arith.constant 0 : i32
    %c0_i32_1 = arith.constant 0 : i32
    return %arg0, %c0_i32, %c0_i32_0 : i32, i32, i32
  }
  func.func @transform_7(%arg0: i32, %arg1: memref<128xi32, #tpu.memory_space<smem>>, %arg2: memref<128xi32, #tpu.memory_space<smem>>) -> (i32, i32, i32) {
    %c0_i32 = arith.constant 0 : i32
    %c0_i32_0 = arith.constant 0 : i32
    %c0_i32_1 = arith.constant 0 : i32
    return %arg0, %c0_i32, %c0_i32_0 : i32, i32, i32
  }
  func.func @transform_8(%arg0: i32, %arg1: memref<128xi32, #tpu.memory_space<smem>>, %arg2: memref<128xi32, #tpu.memory_space<smem>>) -> (i32, i32, i32) {
    %c0_i32 = arith.constant 0 : i32
    %c0_i32_0 = arith.constant 0 : i32
    %c0_i32_1 = arith.constant 0 : i32
    return %arg0, %c0_i32, %c0_i32_0 : i32, i32, i32
  }
  func.func @transform_9(%arg0: i32, %arg1: memref<128xi32, #tpu.memory_space<smem>>, %arg2: memref<128xi32, #tpu.memory_space<smem>>) -> (i32, i32, i32) {
    %c0_i32 = arith.constant 0 : i32
    %c0_i32_0 = arith.constant 0 : i32
    %c0_i32_1 = arith.constant 0 : i32
    return %arg0, %c0_i32, %c0_i32_0 : i32, i32, i32
  }
  func.func @transform_10(%arg0: i32, %arg1: memref<128xi32, #tpu.memory_space<smem>>, %arg2: memref<128xi32, #tpu.memory_space<smem>>) -> (i32, i32, i32) {
    %c0_i32 = arith.constant 0 : i32
    %c0_i32_0 = arith.constant 0 : i32
    %c0_i32_1 = arith.constant 0 : i32
    return %arg0, %c0_i32, %c0_i32_0 : i32, i32, i32
  }
  func.func @transform_11(%arg0: i32, %arg1: memref<128xi32, #tpu.memory_space<smem>>, %arg2: memref<128xi32, #tpu.memory_space<smem>>) -> (i32, i32, i32) {
    %c0_i32 = arith.constant 0 : i32
    %c0_i32_0 = arith.constant 0 : i32
    %c0_i32_1 = arith.constant 0 : i32
    return %arg0, %c0_i32, %c0_i32_0 : i32, i32, i32
  }
  func.func @transform_12(%arg0: i32, %arg1: memref<128xi32, #tpu.memory_space<smem>>, %arg2: memref<128xi32, #tpu.memory_space<smem>>) -> (i32, i32, i32) {
    %c0_i32 = arith.constant 0 : i32
    %c0_i32_0 = arith.constant 0 : i32
    %c0_i32_1 = arith.constant 0 : i32
    return %arg0, %c0_i32, %c0_i32_0 : i32, i32, i32
  }
  func.func @transform_13(%arg0: i32, %arg1: memref<128xi32, #tpu.memory_space<smem>>, %arg2: memref<128xi32, #tpu.memory_space<smem>>) -> (i32, i32, i32) {
    %c0_i32 = arith.constant 0 : i32
    %c0_i32_0 = arith.constant 0 : i32
    %c0_i32_1 = arith.constant 0 : i32
    return %arg0, %c0_i32, %c0_i32_0 : i32, i32, i32
  }
  func.func @transform_14(%arg0: i32, %arg1: memref<128xi32, #tpu.memory_space<smem>>, %arg2: memref<128xi32, #tpu.memory_space<smem>>) -> (i32, i32, i32) {
    %c0_i32 = arith.constant 0 : i32
    %c0_i32_0 = arith.constant 0 : i32
    %c0_i32_1 = arith.constant 0 : i32
    return %arg0, %c0_i32, %c0_i32_0 : i32, i32, i32
  }
  func.func @transform_15(%arg0: i32, %arg1: memref<128xi32, #tpu.memory_space<smem>>, %arg2: memref<128xi32, #tpu.memory_space<smem>>) -> (i32, i32, i32) {
    %c0_i32 = arith.constant 0 : i32
    %c0_i32_0 = arith.constant 0 : i32
    %c0_i32_1 = arith.constant 0 : i32
    return %arg0, %c0_i32, %c0_i32_0 : i32, i32, i32
  }
  func.func @transform_16(%arg0: i32, %arg1: memref<128xi32, #tpu.memory_space<smem>>, %arg2: memref<128xi32, #tpu.memory_space<smem>>) -> (i32, i32, i32) {
    %c0_i32 = arith.constant 0 : i32
    %c0_i32_0 = arith.constant 0 : i32
    %c0_i32_1 = arith.constant 0 : i32
    return %arg0, %c0_i32, %c0_i32_0 : i32, i32, i32
  }
  func.func @transform_17(%arg0: i32, %arg1: memref<128xi32, #tpu.memory_space<smem>>, %arg2: memref<128xi32, #tpu.memory_space<smem>>) -> (i32, i32, i32) {
    %c0_i32 = arith.constant 0 : i32
    %c0_i32_0 = arith.constant 0 : i32
    %c0_i32_1 = arith.constant 0 : i32
    return %arg0, %c0_i32, %c0_i32_0 : i32, i32, i32
  }
  func.func @transform_18(%arg0: i32, %arg1: memref<128xi32, #tpu.memory_space<smem>>, %arg2: memref<128xi32, #tpu.memory_space<smem>>) -> (i32, i32) {
    %c0_i32 = arith.constant 0 : i32
    %c0_i32_0 = arith.constant 0 : i32
    %c0_i32_1 = arith.constant 0 : i32
    return %c0_i32, %c0_i32_0 : i32, i32
  }
}

</mosaic_0001>

<bundles_post_ra>
// kernel: tpu_custom_call.1
= control target key start
LH: loop header
LB: loop body
LE: loop exit
PB: predicated region body
PF: predicated region fallthrough
CT: control target
= control target key end

     0   :  { %s4196_s26 = smov [#allocation7]   ;;  %s5216_s0 = inlined_call_operand.vmem [shape: s32[128], index: 0, kind: input, shape index: {}]   ;;  %s5217_s2 = inlined_call_operand.hbm [shape: f32[64,128], index: 2, kind: input, shape index: {}]   ;;  %s5218_s3 = inlined_call_operand.hbm [shape: f32[64,128], index: 3, kind: input, shape index: {}]   ;;  %s5219_s4 = inlined_call_operand.vmem [shape: f32[128,128], index: 4, kind: input, shape index: {}]   ;;  %s5220_s5 = inlined_call_operand.vmem [shape: f32[128,1], index: 5, kind: input, shape index: {}]   ;;  %s5221_s6 = inlined_call_operand.hbm [shape: bf16[2,128,128], index: 6, kind: input, shape index: {}]   ;;  %s5222_s7 = inlined_call_operand.vmem [shape: f32[2,1,128], index: 7, kind: input, shape index: {}]   ;;  %s5223_s8 = inlined_call_operand.hbm [shape: bf16[2,128,128], index: 8, kind: input, shape index: {}]   ;;  %s5224_s9 = inlined_call_operand.vmem [shape: f32[2,1,128], index: 9, kind: input, shape index: {}]   ;;  %s5225_s10 = inlined_call_operand.hbm [shape: bf16[2,128,128], index: 10, kind: input, shape index: {}]   ;;  %s5226_s11 = inlined_call_operand.hbm [shape: bf16[2,128,128], index: 11, kind: input, shape index: {}]   ;;  %s5227_s12 = inlined_call_operand.vmem [shape: f32[2,1,128], index: 12, kind: input, shape index: {}]   ;;  %s5228_s13 = inlined_call_operand.hbm [shape: bf16[2,128,128], index: 13, kind: input, shape index: {}]   ;;  %s5229_s14 = inlined_call_operand.hbm [shape: bf16[2,128,128], index: 14, kind: input, shape index: {}]   ;;  %s5230_s15 = inlined_call_operand.vmem [shape: f32[2,1,128], index: 15, kind: input, shape index: {}]   ;;  %s5231_s16 = inlined_call_operand.hbm [shape: bf16[2,128,128], index: 16, kind: input, shape index: {}]   ;;  %s5232_s17 = inlined_call_operand.vmem [shape: f32[2,1,128], index: 17, kind: input, shape index: {}]   ;;  %s5233_s18 = inlined_call_operand.hbm [shape: bf16[2,128,128], index: 18, kind: input, shape index: {}]   ;;  %s5234_s19 = inlined_call_operand.vmem [shape: f32[2,1,128], index: 19, kind: input, shape index: {}]   ;;  %s5235_s20 = inlined_call_operand.hbm [shape: f32[64,128], index: 20, kind: output, shape index: {}]   ;;  %s5236_s1 = inlined_call_operand.hbm [shape: s32[128], index: 1, kind: input, shape index: {}]  }
   0x1   :  { %5248 = sst [smem:[#allocation30_spill]] %s5216_s0  ;;  %s31_s25 = sshll.u32 %s5236_s1, 4  ;;  %s32_s25 = int_to_ptr.hbm [resolvable:$true] %s31_s25 }
   0x2   :  { %5249 = sst [smem:[#allocation31_spill]] %s5217_s2 }
   0x3   :  { %5250 = sst [smem:[#allocation32_spill]] %s5218_s3 }
   0x4   :  { %5251 = sst [smem:[#allocation33_spill]] %s5219_s4  ;;  %s4195_s4 = smov [#allocation6]  }
   0x5   :  { %5252 = sst [smem:[#allocation34_spill]] %s5220_s5 }
   0x6   :  { %5253 = sst [smem:[#allocation35_spill]] %s5221_s6 }
   0x7   :  { %5254 = sst [smem:[#allocation36_spill]] %s5222_s7 }
   0x8   :  { %5255 = sst [smem:[#allocation37_spill]] %s5223_s8 }
   0x9   :  { %5256 = sst [smem:[#allocation38_spill]] %s5224_s9 }
   0xa   :  { %5257 = sst [smem:[#allocation39_spill]] %s5225_s10 }
   0xb   :  { %5258 = sst [smem:[#allocation40_spill]] %s5227_s12 }
   0xc   :  { %5259 = sst [smem:[#allocation41_spill]] %s5230_s15 }
   0xd   :  { %5260 = sst [smem:[#allocation42_spill]] %s5232_s17 }
   0xe   :  { %5261 = sst [smem:[#allocation43_spill]] %s5234_s19 }
   0xf   :  { %5262 = sst [smem:[#allocation44_spill]] %s5235_s20 }
  0x10   :  { %s5263_s23 = sld [smem:[#allocation30_spill]] }
  0x16   :  { %s26_s15 = sshll.u32 %s5263_s23, 4  ;;  %s27_s15 = int_to_ptr.vmem [resolvable:$true] %s26_s15 }
  0x17   :  { %29 = dma.vmem_to_smem %s27_s15, 16, %s4195_s4, [#allocation5] }
  0x18   :  { %34 = dma.hbm_to_smem %s32_s25, 16, %s4196_s26, [#allocation5] }
  0x19   :  { %4153 = dma.done.wait [#allocation5], 32 }
  0x1a   :  { %4154 = vsyncadd [#allocation5], 4294967264 }
  0x1b   :  { %37 = sfence }
  0x1c   :  { %38 = vsyncpa [#allocation9], 0 }
  0x1d   :  { %39 = vsyncpa [#allocation12], 0 }
  0x1e   :  { %40 = vsyncpa [#allocation10], 0  ;;  %s4319_s27 = smov 0   ;;  %s4321_s28 = smov 0  }
  0x1f   :  { %s4323_s5 = smov 0   ;;  %s4325_s29 = smov 0  }
  0x20 LB: > { %5264 = sst [smem:[#allocation27_spill]] %s4181_s5  ;;  %s4338_s1 = sadd.s32 4294967295, %s4185_s29   ;;  %s4185_s29 = sphi %s4325_s29, %s5321_s29   ;;  %s4181_s5 = sphi %s4323_s5, %s5323_s5   ;;  %s4177_s28 = sphi %s4321_s28, %s5325_s28   ;;  %s4173_s27 = sphi %s4319_s27, %s5324_s27  }
  0x21   : > { %s4341_s15 = sadd.s32 1, %s4185_s29   ;;  %s137_s0 = sadd.s32 1, %s4181_s5 }
  0x22   : > { %5265 = sst [smem:[#allocation28_spill]] %s4341_s15  ;;  %s134_s30 = ssub.s32 %s4185_s29, %s4341_s15 }
  0x23   : > { %p135_p0 = scmp.eq.s32.totalorder %s134_s30, 0  ;;  %p144_p1 = scmp.ne.s32.totalorder %s4181_s5, %s4177_s28 }
  0x24   : > { %p145_p2 = scmp.eq.s32.totalorder %s4185_s29, 0  ;;  %p150_p3 = scmp.ne.s32.totalorder %s4177_s28, %s4173_s27 }
  0x25   : > { %s4351_s21 = scalar_select %p135_p0, %s4181_s5, %s137_s0  }
  0x26   : > { %p4353_p4 = por %p145_p2, %p144_p1  ;;  %p151_p5 = scmp.eq.s32.totalorder %s4338_s1, 0 }
  0x27   : > { %5266 = sst [smem:[#allocation29_spill]] %s4351_s21  ;;  %p3052_p6 = scmp.ge.s32.totalorder %s4185_s29, 1 }
  0x28   : > { %p520_p7 = scmp.lt.s32.totalorder %s4185_s29, 3  ;;  %p4362_p8 = por %p151_p5, %p150_p3 }
  0x29   : > { %p3053_p9 = scmp.ne.s32.totalorder %s4338_s1, 0  ;;  %s5270_s25 = sld [smem:[#allocation31_spill]] }
  0x2a   : > { %p4367_p10 = pnand %p3052_p6, %p520_p7  ;;  %s4197_s26 = smov [#allocation8]  }
  0x2b   : > { %s533_s27 = sshll.u32 %s4197_s26, 4  ;;  %p3542_p13 = scmp.lt.s32.totalorder %s4185_s29, 2  ;;  %s534_s27 = int_to_ptr.vmem [resolvable:$true] %s533_s27 }
  0x2c   : > { %p3508_p11 = pneg %p4367_p10  ;;  %s569_s0 = sand.u32 1, %s4181_s5  }
  0x2d   : > { %s5242_s21 = smov 128   ;;  %s5243_s15 = smov 8  }
  0x2e   : > { %p4378_p12 = pnand %p3508_p11, %p151_p5  ;;  %p4391_p0 = pnand %p3542_p13, %p4353_p4 }
  0x2f   : > { %s531_s4 = sshll.u32 %s5270_s25, 4  ;;  %s567_s3 = sand.u32 1, %s4185_s29   ;;  %s532_s4 = int_to_ptr.hbm [resolvable:$true] %s531_s4 }
  0x30   : > { %3511 = dma.hbm_to_vmem [thread:$0]  (!%p4378_p12), %s532_s4, 1024, %s534_s27, [#allocation9], %s5242_s21, %s5242_s21, %s5243_s15  }
  0x31   : > { %s4396_s25 = sshll.u32 %s569_s0, 6  ;;  %s4399_s26 = sshll.u32 %s4185_s29, 6 }
  0x32   : > { %s571_s5 = scalar_lea.vmem [#allocation13], %s4396_s25  ;;  %s5273_s6 = sld [smem:[#allocation35_spill]] }
  0x33   : > { %s579_s20 = sshll.u32 %s571_s5, 4  ;;  %s4406_s4 = scalar_lea.sflag [#allocation9], %s567_s3  ;;  %s580_s20 = int_to_ptr.vmem [resolvable:$true] %s579_s20 }
  0x34   : > { %p4410_p2 = pneg %p4391_p0 }
  0x38   : > { %s576_s12 = scalar_lea.hbm %s5273_s6, %s4399_s26 }
  0x39   : > { %s577_s2 = sshll.u32 %s576_s12, 4  ;;  %s3838_s12 = scalar_lea.hbm %s5273_s6, 128  ;;  %s578_s2 = int_to_ptr.hbm [resolvable:$true] %s577_s2 }
  0x3a   : > { %s3831_s27 = sshra.s32 %s578_s2, 4  ;;  %s3832_s27 = int_to_ptr.hbm [resolvable:$true] %s3831_s27 }
  0x3b   : > { %s3833_s21 = scalar_lea.hbm %s3832_s27, 64  ;;  %p3839_p6 = scmp.lt.s32.totalorder %s3832_s27, %s5273_s6 }
  0x3c   : > { %p3834_p1 = scmp.ne.s32.totalorder %s3832_s27, %s3833_s21  ;;  %p3840_p7 = scmp.lt.s32.totalorder %s3838_s12, %s3833_s21 }
  0x3e   : > { %p3836_p3 = pnand %p4410_p2, %p3834_p1  ;;  %p3841_p11 = por %p3840_p7, %p3839_p6 }
  0x40   : > { %p3837_p4 = pneg %p3836_p3 }
  0x42   : > { %p3842_p13 = pnand %p3841_p11, %p3837_p4 }
  0x44   : > { %3845 = shalt.err (!%p3842_p13)
}
  0x45   : > { %s5244_s3 = smov 64   ;;  %s5246_s15 = smov 4  }
  0x46   : > { %3518 = dma.hbm_to_vmem [thread:$0]  (!%p4391_p0), %s578_s2, 1024, %s580_s20, %s4406_s4, %s5244_s3, %s5244_s3, %s5246_s15  }
  0x47   : > { %s5275_s8 = sld [smem:[#allocation37_spill]]  ;;  %s599_s12 = scalar_lea.vmem [#allocation14], %s4396_s25 }
  0x48   : > { %s607_s5 = sshll.u32 %s599_s12, 4  ;;  %s608_s5 = int_to_ptr.vmem [resolvable:$true] %s607_s5 }
  0x4d   : > { %s604_s27 = scalar_lea.hbm %s5275_s8, %s4399_s26  ;;  %s3868_s20 = scalar_lea.hbm %s5275_s8, 128 }
  0x4e   : > { %s605_s21 = sshll.u32 %s604_s27, 4  ;;  %s606_s21 = int_to_ptr.hbm [resolvable:$true] %s605_s21 }
  0x4f   : > { %s3861_s0 = sshra.s32 %s606_s21, 4  ;;  %s3862_s0 = int_to_ptr.hbm [resolvable:$true] %s3861_s0 }
  0x50   : > { %s3863_s6 = scalar_lea.hbm %s3862_s0, 64  ;;  %p3869_p6 = scmp.lt.s32.totalorder %s3862_s0, %s5275_s8 }
  0x51   : > { %p3864_p1 = scmp.ne.s32.totalorder %s3862_s0, %s3863_s6  ;;  %p3870_p7 = scmp.lt.s32.totalorder %s3868_s20, %s3863_s6 }
  0x53   : > { %p3866_p3 = pnand %p3864_p1, %p4410_p2  ;;  %p3871_p11 = por %p3870_p7, %p3869_p6 }
  0x55   : > { %p3867_p4 = pneg %p3866_p3 }
  0x57   : > { %p3872_p13 = pnand %p3871_p11, %p3867_p4 }
  0x59   : > { %3875 = shalt.err (!%p3872_p13)
}
  0x5a   : > { %s5276_s17 = smov 64   ;;  %s5277_s10 = sld [smem:[#allocation39_spill]] }
  0x5b   : > { %3521 = dma.hbm_to_vmem [thread:$0]  (!%p4391_p0), %s606_s21, 1024, %s608_s5, %s4406_s4, %s5276_s17, %s5276_s17, %s5246_s15  }
  0x5c   : > { %s627_s27 = scalar_lea.vmem [#allocation15], %s4396_s25 }
  0x5d   : > { %s635_s6 = sshll.u32 %s627_s27, 4  ;;  %s636_s6 = int_to_ptr.vmem [resolvable:$true] %s635_s6 }
  0x60   : > { %s632_s19 = scalar_lea.hbm %s5277_s10, %s4399_s26  ;;  %s3898_s21 = scalar_lea.hbm %s5277_s10, 128 }
  0x61   : > { %s633_s3 = sshll.u32 %s632_s19, 4  ;;  %s634_s3 = int_to_ptr.hbm [resolvable:$true] %s633_s3 }
  0x62   : > { %s3891_s12 = sshra.s32 %s634_s3, 4  ;;  %s3892_s12 = int_to_ptr.hbm [resolvable:$true] %s3891_s12 }
  0x63   : > { %s3893_s0 = scalar_lea.hbm %s3892_s12, 64  ;;  %p3899_p6 = scmp.lt.s32.totalorder %s3892_s12, %s5277_s10 }
  0x64   : > { %p3894_p1 = scmp.ne.s32.totalorder %s3892_s12, %s3893_s0  ;;  %p3900_p7 = scmp.lt.s32.totalorder %s3898_s21, %s3893_s0 }
  0x66   : > { %p3896_p3 = pnand %p3894_p1, %p4410_p2  ;;  %p3901_p11 = por %p3900_p7, %p3899_p6 }
  0x68   : > { %p3897_p4 = pneg %p3896_p3 }
  0x6a   : > { %p3902_p13 = pnand %p3901_p11, %p3897_p4 }
  0x6c   : > { %3905 = shalt.err (!%p3902_p13)
}
  0x6d   : > { %s5278_s7 = smov 4   ;;  %s654_s27 = scalar_lea.hbm %s5226_s11, %s4399_s26 }
  0x6e   : > { %3524 = dma.hbm_to_vmem [thread:$0]  (!%p4391_p0), %s634_s3, 1024, %s636_s6, %s4406_s4, %s5276_s17, %s5276_s17, %s5278_s7  }
  0x6f   : > { %s655_s15 = sshll.u32 %s654_s27, 4  ;;  %s649_s12 = scalar_lea.vmem [#allocation16], %s4396_s25  ;;  %s656_s15 = int_to_ptr.hbm [resolvable:$true] %s655_s15 }
  0x70   : > { %s657_s0 = sshll.u32 %s649_s12, 4  ;;  %s3921_s20 = sshra.s32 %s656_s15, 4  ;;  %s658_s0 = int_to_ptr.vmem [resolvable:$true] %s657_s0  ;;  %s3922_s20 = int_to_ptr.hbm [resolvable:$true] %s3921_s20 }
  0x71   : > { %s3923_s2 = scalar_lea.hbm %s3922_s20, 64  ;;  %s3928_s3 = scalar_lea.hbm %s5226_s11, 128 }
  0x72   : > { %p3924_p1 = scmp.ne.s32.totalorder %s3922_s20, %s3923_s2  ;;  %p3929_p6 = scmp.lt.s32.totalorder %s3922_s20, %s5226_s11 }
  0x73   : > { %p3930_p7 = scmp.lt.s32.totalorder %s3928_s3, %s3923_s2 }
  0x74   : > { %p3926_p3 = pnand %p3924_p1, %p4410_p2 }
  0x75   : > { %p3931_p11 = por %p3930_p7, %p3929_p6 }
  0x76   : > { %p3927_p4 = pneg %p3926_p3 }
  0x78   : > { %p3932_p13 = pnand %p3931_p11, %p3927_p4 }
  0x7a   : > { %3935 = shalt.err (!%p3932_p13)
}
  0x7b   : > { %3527 = dma.hbm_to_vmem [thread:$0]  (!%p4391_p0), %s656_s15, 1024, %s658_s0, %s4406_s4, %s5276_s17, %s5276_s17, %s5278_s7  }
  0x7c   : > { %s682_s27 = scalar_lea.hbm %s5228_s13, %s4399_s26  ;;  %s677_s12 = scalar_lea.vmem [#allocation17], %s4396_s25 }
  0x7d   : > { %s683_s8 = sshll.u32 %s682_s27, 4  ;;  %s685_s20 = sshll.u32 %s677_s12, 4  ;;  %s684_s8 = int_to_ptr.hbm [resolvable:$true] %s683_s8  ;;  %s686_s20 = int_to_ptr.vmem [resolvable:$true] %s685_s20 }
  0x7e   : > { %s3951_s2 = sshra.s32 %s684_s8, 4  ;;  %s3958_s15 = scalar_lea.hbm %s5228_s13, 128  ;;  %s3952_s2 = int_to_ptr.hbm [resolvable:$true] %s3951_s2 }
  0x7f   : > { %s3953_s21 = scalar_lea.hbm %s3952_s2, 64  ;;  %p3959_p6 = scmp.lt.s32.totalorder %s3952_s2, %s5228_s13 }
  0x80   : > { %p3954_p1 = scmp.ne.s32.totalorder %s3952_s2, %s3953_s21  ;;  %p3960_p7 = scmp.lt.s32.totalorder %s3958_s15, %s3953_s21 }
  0x82   : > { %p3956_p3 = pnand %p3954_p1, %p4410_p2  ;;  %p3961_p11 = por %p3960_p7, %p3959_p6 }
  0x84   : > { %p3957_p4 = pneg %p3956_p3 }
  0x86   : > { %p3962_p13 = pnand %p3961_p11, %p3957_p4 }
  0x88   : > { %3965 = shalt.err (!%p3962_p13)
}
  0x89   : > { %3530 = dma.hbm_to_vmem [thread:$0]  (!%p4391_p0), %s684_s8, 1024, %s686_s20, %s4406_s4, %s5276_s17, %s5276_s17, %s5278_s7  }
  0x8a   : > { %s704_s27 = scalar_lea.hbm %s5229_s14, %s4399_s26  ;;  %s699_s2 = scalar_lea.vmem [#allocation18], %s4396_s25 }
  0x8b   : > { %s705_s12 = sshll.u32 %s704_s27, 4  ;;  %s707_s21 = sshll.u32 %s699_s2, 4  ;;  %s706_s12 = int_to_ptr.hbm [resolvable:$true] %s705_s12  ;;  %s708_s21 = int_to_ptr.vmem [resolvable:$true] %s707_s21 }
  0x8c   : > { %s3981_s5 = sshra.s32 %s706_s12, 4  ;;  %s3988_s8 = scalar_lea.hbm %s5229_s14, 128  ;;  %s3982_s5 = int_to_ptr.hbm [resolvable:$true] %s3981_s5 }
  0x8d   : > { %s3983_s3 = scalar_lea.hbm %s3982_s5, 64  ;;  %p3989_p6 = scmp.lt.s32.totalorder %s3982_s5, %s5229_s14 }
  0x8e   : > { %p3984_p1 = scmp.ne.s32.totalorder %s3982_s5, %s3983_s3  ;;  %p3990_p7 = scmp.lt.s32.totalorder %s3988_s8, %s3983_s3 }
  0x90   : > { %p3986_p3 = pnand %p3984_p1, %p4410_p2  ;;  %p3991_p11 = por %p3990_p7, %p3989_p6 }
  0x92   : > { %p3987_p4 = pneg %p3986_p3 }
  0x94   : > { %p3992_p13 = pnand %p3991_p11, %p3987_p4 }
  0x96   : > { %3995 = shalt.err (!%p3992_p13)
}
  0x97   : > { %3533 = dma.hbm_to_vmem [thread:$0]  (!%p4391_p0), %s706_s12, 1024, %s708_s21, %s4406_s4, %s5276_s17, %s5276_s17, %s5278_s7  }
  0x98   : > { %s732_s27 = scalar_lea.hbm %s5231_s16, %s4399_s26  ;;  %s727_s5 = scalar_lea.vmem [#allocation19], %s4396_s25 }
  0x99   : > { %s733_s2 = sshll.u32 %s732_s27, 4  ;;  %s735_s3 = sshll.u32 %s727_s5, 4  ;;  %s734_s2 = int_to_ptr.hbm [resolvable:$true] %s733_s2  ;;  %s736_s3 = int_to_ptr.vmem [resolvable:$true] %s735_s3 }
  0x9a   : > { %s4011_s15 = sshra.s32 %s734_s2, 4  ;;  %s4018_s12 = scalar_lea.hbm %s5231_s16, 128  ;;  %s4012_s15 = int_to_ptr.hbm [resolvable:$true] %s4011_s15 }
  0x9b   : > { %s4013_s0 = scalar_lea.hbm %s4012_s15, 64  ;;  %p4019_p6 = scmp.lt.s32.totalorder %s4012_s15, %s5231_s16 }
  0x9c   : > { %p4014_p1 = scmp.ne.s32.totalorder %s4012_s15, %s4013_s0  ;;  %p4020_p7 = scmp.lt.s32.totalorder %s4018_s12, %s4013_s0 }
  0x9e   : > { %p4016_p3 = pnand %p4014_p1, %p4410_p2  ;;  %p4021_p11 = por %p4020_p7, %p4019_p6 }
  0xa0   : > { %p4017_p4 = pneg %p4016_p3 }
  0xa2   : > { %p4022_p13 = pnand %p4021_p11, %p4017_p4 }
  0xa4   : > { %4025 = shalt.err (!%p4022_p13)
}
  0xa5   : > { %3536 = dma.hbm_to_vmem [thread:$0]  (!%p4391_p0), %s734_s2, 1024, %s736_s3, %s4406_s4, %s5276_s17, %s5276_s17, %s5278_s7  }
  0xa6   : > { %s5279_s27 = sld [smem:[#allocation32_spill]]  ;;  %s4202_s15 = smov [#allocation11]  }
  0xa7   : > { %s547_s0 = sshll.u32 %s4202_s15, 4  ;;  %s5280_s8 = smov 8   ;;  %s548_s0 = int_to_ptr.vmem [resolvable:$true] %s547_s0 }
  0xa8   : > { %s5281_s20 = smov 128   ;;  %s760_s6 = scalar_lea.hbm %s5233_s18, %s4399_s26 }
  0xa9   : > { %s755_s10 = scalar_lea.vmem [#allocation20], %s4396_s25  ;;  %s761_s3 = sshll.u32 %s760_s6, 4  ;;  %s762_s3 = int_to_ptr.hbm [resolvable:$true] %s761_s3 }
  0xaa   : > { %s763_s2 = sshll.u32 %s755_s10, 4  ;;  %s4071_s9 = sshra.s32 %s762_s3, 4  ;;  %s764_s2 = int_to_ptr.vmem [resolvable:$true] %s763_s2  ;;  %s4072_s9 = int_to_ptr.hbm [resolvable:$true] %s4071_s9 }
  0xab   : > { %s4073_s19 = scalar_lea.hbm %s4072_s9, 64 }
  0xac   : > { %s545_s5 = sshll.u32 %s5279_s27, 4  ;;  %p4074_p1 = scmp.ne.s32.totalorder %s4072_s9, %s4073_s19  ;;  %s546_s5 = int_to_ptr.hbm [resolvable:$true] %s545_s5 }
  0xad   : > { %3514 = dma.hbm_to_vmem [thread:$0]  (!%p4378_p12), %s546_s5, 1024, %s548_s0, [#allocation12], %s5281_s20, %s5281_s20, %s5280_s8  }
  0xae   : > { %p4076_p3 = pnand %p4074_p1, %p4410_p2  ;;  %s4078_s5 = scalar_lea.hbm %s5233_s18, 128 }
  0xaf   : > { %p4079_p12 = scmp.lt.s32.totalorder %s4072_s9, %s5233_s18  ;;  %p4080_p6 = scmp.lt.s32.totalorder %s4078_s5, %s4073_s19 }
  0xb0   : > { %p4077_p4 = pneg %p4076_p3 }
  0xb1   : > { %p4081_p7 = por %p4080_p6, %p4079_p12 }
  0xb3   : > { %p4082_p11 = pnand %p4081_p7, %p4077_p4 }
  0xb5   : > { %4085 = shalt.err (!%p4082_p11)
}
  0xb6   : > { %3539 = dma.hbm_to_vmem [thread:$0]  (!%p4391_p0), %s762_s3, 1024, %s764_s2, %s4406_s4, %s5276_s17, %s5276_s17, %s5278_s7  }
  0xb7   : > { %781 = sbr.rel (%p4367_p10) target bundleno = 1456 (0x5b0), region = 92 }
  0xbc   : > { %4156 = dma.done.wait (%p151_p5), [#allocation9], 1024  }
  0xbd   : > { %4158 = vsyncadd (%p151_p5), [#allocation9], 4294966272 }
  0xbe   : > { %4160 = dma.done.wait (%p151_p5), [#allocation12], 1024  }
  0xbf   : > { %4162 = vsyncadd (%p151_p5), [#allocation12], 4294966272  ;;  %s793_s10 = sand.u32 1, %s4338_s1   ;;  %s795_s24 = sand.u32 1, %s4177_s28  }
  0xc0   : > { %s3083_s25 = sshll.u32 %s795_s24, 6  ;;  %s794_s23 = scalar_lea.sflag [#allocation9], %s793_s10 }
  0xc1   : > { %s4581_s26 = scalar_lea.vmem [#allocation13], %s3083_s25 }
  0xc2   : > { %4164 = dma.done.wait (%p4362_p8), %s794_s23, 8192  }
  0xc3   : > { %4166 = vsyncadd (%p4362_p8), %s794_s23, 4294959104  ;;  %p969_p10 = scmp.lt.s32.totalorder %s4338_s1, 1  ;;  %s5283_s21 = sld [smem:[#allocation38_spill]] }
  0xc4   : > { %s5284_s3 = sld [smem:[#allocation40_spill]]  ;;  %s4615_s8 = scalar_lea.vmem [#allocation14], %s3083_s25 }
  0xc5   : > { %s4589_s4 = scalar_select %p969_p10, %s4338_s1, 1 }
  0xc6   : > { %s5285_s27 = sld [smem:[#allocation41_spill]]  ;;  %s4617_s20 = scalar_lea.vmem [#allocation15], %s3083_s25 }
  0xc7   : > { %s5286_s10 = sld [smem:[#allocation42_spill]]  ;;  %s4619_s12 = scalar_lea.vmem [#allocation16], %s3083_s25 }
  0xc8   : > { %s5287_s17 = sld [smem:[#allocation43_spill]]  ;;  %s4623_s6 = scalar_lea.vmem [#allocation18], %s3083_s25 }
  0xc9   : > { %s974_s22 = scalar_lea.vmem %s5283_s21, %s4589_s4  ;;  %s4621_s21 = scalar_lea.vmem [#allocation17], %s3083_s25 }
  0xca   : > { %s977_s9 = scalar_lea.vmem %s5284_s3, %s4589_s4  ;;  %s4625_s2 = scalar_lea.vmem [#allocation19], %s3083_s25 }
  0xcb   : > { %s4627_s3 = scalar_lea.vmem [#allocation20], %s3083_s25  ;;  %990 = sbr.rel (%p3053_p9) target bundleno = 217 (0xd9), region = 136 }
  0xcc   : > { %s980_s5 = scalar_lea.vmem %s5285_s27, %s4589_s4 }
  0xcd   : > { %s983_s24 = scalar_lea.vmem %s5286_s10, %s4589_s4 }
  0xce   : > { %s986_s7 = scalar_lea.vmem %s5287_s17, %s4589_s4 }
  0xd0   : > { %v991_v0 = vld [vmem:[#allocation8] sm:$0xff]  ;;  %v992_v1 = vld [vmem:[#allocation8 + $0x8] sm:$0xff]  ;;  %v993_v2 = vld [vmem:[#allocation8 + $0x10] sm:$0xff] }
  0xd1   : > { %999 = vst [vmem:[#allocation21] sm:$0xff] %v991_v0  ;;  %v994_v3 = vld [vmem:[#allocation8 + $0x18] sm:$0xff]  ;;  %v995_v4 = vld [vmem:[#allocation8 + $0x20] sm:$0xff]  ;;  %v996_v5 = vld [vmem:[#allocation8 + $0x28] sm:$0xff] }
  0xd2   : > { %1000 = vst [vmem:[#allocation21 + $0x8] sm:$0xff] %v992_v1  ;;  %v997_v6 = vld [vmem:[#allocation8 + $0x30] sm:$0xff]  ;;  %v998_v7 = vld [vmem:[#allocation8 + $0x38] sm:$0xff] }
  0xd3   : > { %1001 = vst [vmem:[#allocation21 + $0x10] sm:$0xff] %v993_v2 }
  0xd4   : > { %1002 = vst [vmem:[#allocation21 + $0x18] sm:$0xff] %v994_v3 }
  0xd5   : > { %1003 = vst [vmem:[#allocation21 + $0x20] sm:$0xff] %v995_v4 }
  0xd6   : > { %1004 = vst [vmem:[#allocation21 + $0x28] sm:$0xff] %v996_v5 }
  0xd7   : > { %1005 = vst [vmem:[#allocation21 + $0x30] sm:$0xff] %v997_v6 }
  0xd8   : > { %1006 = vst [vmem:[#allocation21 + $0x38] sm:$0xff] %v998_v7 }
  0xd9 PF: > { %v3407_v8 = vld [vmem:[%s4581_s26 + $0x38] sm:$0xff]  ;;  %v3406_v9 = vld [vmem:[%s4581_s26 + $0x30] sm:$0xff]  ;;  %v3405_v10 = vld [vmem:[%s4581_s26 + $0x28] sm:$0xff]  ;;  %s5288_s30 = sld [smem:[#allocation33_spill]] }
  0xda   : > { %1107 = vmatpush.bf16.msra.mxu0 %v3407_v8  ;;  %3464 = vmatpush.bf16.msra.mxu2 %v3407_v8  ;;  %v3404_v11 = vld [vmem:[%s4581_s26 + $0x20] sm:$0xff]  ;;  %v3403_v12 = vld [vmem:[%s4581_s26 + $0x18] sm:$0xff]  ;;  %v3402_v13 = vld [vmem:[%s4581_s26 + $0x10] sm:$0xff]  ;;  %s5289_s0 = sld [smem:[#allocation36_spill]] }
  0xdb   : > { %v3401_v14 = vld [vmem:[%s4581_s26 + $0x8] sm:$0xff]  ;;  %v3400_v15 = vld [vmem:[%s4581_s26] sm:$0xff]  ;;  %v3415_v40 = vld [vmem:[%s4615_s8 + $0x38] sm:$0xff]  ;;  %s5291_s29 = sld [smem:[#allocation34_spill]] }
  0xdc   : > { %1488 = vmatpush.bf16.msra.mxu1 %v3415_v40  ;;  %3472 = vmatpush.bf16.msra.mxu3 %v3415_v40  ;;  %v3414_v41 = vld [vmem:[%s4615_s8 + $0x30] sm:$0xff]  ;;  %v3413_v42 = vld [vmem:[%s4615_s8 + $0x28] sm:$0xff]  ;;  %v3412_v43 = vld [vmem:[%s4615_s8 + $0x20] sm:$0xff] }
  0xdd   : > { %v3411_v44 = vld [vmem:[%s4615_s8 + $0x18] sm:$0xff]  ;;  %v3410_v46 = vld [vmem:[%s4615_s8 + $0x10] sm:$0xff]  ;;  %v3409_v50 = vld [vmem:[%s4615_s8 + $0x8] sm:$0xff] }
  0xde   : > { %1108 = vmatpush.bf16.msra.mxu0 %v3406_v9  ;;  %3465 = vmatpush.bf16.msra.mxu2 %v3406_v9  ;;  %v3423_v47 = vld [vmem:[%s4617_s20 + $0x38] sm:$0xff]  ;;  %v3422_v52 = vld [vmem:[%s4617_s20 + $0x30] sm:$0xff]  ;;  %v3408_v54 = vld [vmem:[%s4615_s8] sm:$0xff] }
  0xdf   : > { %v1015_v16 = vld [vmem:[%s5288_s30] sm:$0xff]  ;;  %v1016_v17 = vld [vmem:[%s5288_s30 + $0x8] sm:$0xff]  ;;  %v1017_v22 = vld [vmem:[%s5288_s30 + $0x10] sm:$0xff] }
  0xe0   : > { %v1027_v18 = vld [vmem:[%s5288_s30 + $0x60] sm:$0xff]  ;;  %v1028_v19 = vld [vmem:[%s5288_s30 + $0x68] sm:$0xff]  ;;  %v1047_v20 = vpack.c.bf16 %v1016_v17, %v1015_v16  ;;  %v1018_v23 = vld [vmem:[%s5288_s30 + $0x18] sm:$0xff]  ;;  %1489 = vmatpush.bf16.msra.mxu1 %v3414_v41  ;;  %3473 = vmatpush.bf16.msra.mxu3 %v3414_v41  ;;  %s5290_s10 = scalar_lea.vmem %s5289_s0, %s4589_s4 }
  0xe1   : > { %v1053_v21 = vpack.c.bf16 %v1028_v19, %v1027_v18  ;;  %v1029_v24 = vld [vmem:[%s5288_s30 + $0x70] sm:$0xff]  ;;  %v1030_v25 = vld [vmem:[%s5288_s30 + $0x78] sm:$0xff]  ;;  %v1048_v26 = vpack.c.bf16 %v1018_v23, %v1017_v22  ;;  %v1019_v28 = vld [vmem:[%s5288_s30 + $0x20] sm:$0xff]  ;;  %s5292_s26 = smov %s5291_s29 }
  0xe2   : > { %1109 = vmatpush.bf16.msra.mxu0 %v3405_v10  ;;  %3466 = vmatpush.bf16.msra.mxu2 %v3405_v10  ;;  %v1054_v27 = vpack.c.bf16 %v1030_v25, %v1029_v24  ;;  %v1020_v29 = vld [vmem:[%s5288_s30 + $0x28] sm:$0xff]  ;;  %v1021_v31 = vld [vmem:[%s5288_s30 + $0x30] sm:$0xff]  ;;  %v1022_v32 = vld [vmem:[%s5288_s30 + $0x38] sm:$0xff]  ;;  %v4203_v24 = vmov 0  }
  0xe3   : > { %v1049_v30 = vpack.c.bf16 %v1020_v29, %v1019_v28  ;;  %v1050_v33 = vpack.c.bf16 %v1022_v32, %v1021_v31  ;;  %v1023_v34 = vld [vmem:[%s5288_s30 + $0x40] sm:$0xff]  ;;  %v1024_v35 = vld [vmem:[%s5288_s30 + $0x48] sm:$0xff]  ;;  %v1025_v37 = vld [vmem:[%s5288_s30 + $0x50] sm:$0xff]  ;;  %3608 = vset.pattern.permute.xlu0 %v4203_v24  ;;  %3609 = vset.pattern.permute.xlu1 %v4203_v24 }
  0xe4   : > { %v1051_v36 = vpack.c.bf16 %v1024_v35, %v1023_v34  ;;  %v1026_v38 = vld [vmem:[%s5288_s30 + $0x58] sm:$0xff]  ;;  %1490 = vmatpush.bf16.msra.mxu1 %v3413_v42  ;;  %3474 = vmatpush.bf16.msra.mxu3 %v3413_v42  ;;  %v4697_v45 = vld [vmem:[%s5290_s10] ss:$0 sm:$0xff]  ;;  %v3421_v58 = vld [vmem:[%s4617_s20 + $0x28] sm:$0xff] }
  0xe5   : > { %v1052_v39 = vpack.c.bf16 %v1026_v38, %v1025_v37  ;;  %v3420_v0 = vld [vmem:[%s4617_s20 + $0x20] sm:$0xff]  ;;  %v3419_v9 = vld [vmem:[%s4617_s20 + $0x18] sm:$0xff]  ;;  %v3417_v31 = vld [vmem:[%s4617_s20 + $0x8] sm:$0xff]  ;;  %3610 = vset.pattern.permute.xlu2 %v4203_v24 }
  0xe6   : > { %1110 = vmatpush.bf16.msra.mxu0 %v3404_v11  ;;  %3467 = vmatpush.bf16.msra.mxu2 %v3404_v11  ;;  %v1537_v25 = vld [vmem:[%s5291_s29] sm:$0xff] }
  0xe7   : > { %1555 = vperm.xlu0 %3608, %v1537_v25  }
  0xe8   : > { %1491 = vmatpush.bf16.msra.mxu1 %v3412_v43  ;;  %3475 = vmatpush.bf16.msra.mxu3 %v3412_v43 }
  0xea   : > { %1111 = vmatpush.bf16.msra.mxu0 %v3403_v12  ;;  %3468 = vmatpush.bf16.msra.mxu2 %v3403_v12 }
  0xec   : > { %1492 = vmatpush.bf16.msra.mxu1 %v3411_v44  ;;  %3476 = vmatpush.bf16.msra.mxu3 %v3411_v44  ;;  %v3416_v44 = vld [vmem:[%s4617_s20] sm:$0xff] }
  0xee   : > { %1112 = vmatpush.bf16.msra.mxu0 %v3402_v13  ;;  %3469 = vmatpush.bf16.msra.mxu2 %v3402_v13 }
  0xf0   : > { %1493 = vmatpush.bf16.msra.mxu1 %v3410_v46  ;;  %3477 = vmatpush.bf16.msra.mxu3 %v3410_v46 }
  0xf2   : > { %1113 = vmatpush.bf16.msra.mxu0 %v3401_v14  ;;  %3470 = vmatpush.bf16.msra.mxu2 %v3401_v14  ;;  %v3418_v14 = vld [vmem:[%s4617_s20 + $0x10] sm:$0xff] }
  0xf4   : > { %1494 = vmatpush.bf16.msra.mxu1 %v3409_v50  ;;  %3478 = vmatpush.bf16.msra.mxu3 %v3409_v50 }
  0xf6   : > { %1114 = vmatpush.bf16.msra.mxu0 %v3400_v15  ;;  %3471 = vmatpush.bf16.msra.mxu2 %v3400_v15 }
  0xf8   : > { %1495 = vmatpush.bf16.msra.mxu1 %v3408_v54  ;;  %3479 = vmatpush.bf16.msra.mxu3 %v3408_v54 }
  0xf9   : > { %1115 = vmatmul.bf16.vlgmr.msra.gmra.mxu0 %v1047_v20  ;;  %1145 = vmatmul.bf16.vlgmr.msra.gmra.mxu2 %v1053_v21 }
  0xfa   : > { %1733 = vmatpush.bf16.msrb.mxu2 %v3423_v47 }
  0xfe   : > { %1734 = vmatpush.bf16.msrb.mxu2 %v3422_v52 }
 0x102   : > { %1735 = vmatpush.bf16.msrb.mxu2 %v3421_v58 }
 0x106   : > { %1736 = vmatpush.bf16.msrb.mxu2 %v3420_v0 }
 0x109   : > { %1120 = vmatmul.bf16.gmra.mxu0 %v1048_v26  ;;  %1150 = vmatmul.bf16.gmra.mxu2 %v1054_v27 }
 0x10a   : > { %1737 = vmatpush.bf16.msrb.mxu2 %v3419_v9  ;;  %v1540_v9 = vld [vmem:[%s5292_s26 + $0x18] sm:$0xff] }
 0x10e   : > { %1738 = vmatpush.bf16.msrb.mxu2 %v3418_v14  ;;  %v4790_v14 = vld [vmem:[#allocation21] sm:$0xff] }
 0x112   : > { %1739 = vmatpush.bf16.msrb.mxu2 %v3417_v31 }
 0x116   : > { %1740 = vmatpush.bf16.msrb.mxu2 %v3416_v44 }
 0x119   : > { %1125 = vmatmul.bf16.gmra.mxu0 %v1049_v30  ;;  %v1539_v30 = vld [vmem:[%s5292_s26 + $0x10] sm:$0xff] }
 0x11a   : > { %1565 = vperm.xlu1 %3609, %v1539_v30  }
 0x122   : > { %1570 = vperm.xlu1 %3609, %v1540_v9  }
 0x129   : > { %1130 = vmatmul.bf16.gmra.mxu0 %v1050_v33 }
 0x139   : > { %1135 = vmatmul.bf16.gmra.mxu0 %v1051_v36 }
 0x149   : > { %1140 = vmatmul.bf16.gmra.mxu0 %v1052_v39 }
 0x176   : > { %v1116_v48 = vpop.f32.mrf.mxu0 }
 0x177   : > { %v4702_v49 = vadd.f32 %v4697_v45, %v1116_v48 }
 0x179   : > { %v1172_v51 = vand.u32 2147483647, %v4702_v49  ;;  %v1156_v40 = vmax.f32 %v4702_v49, 0.0 }
 0x17b   : > { %v1188_v53 = vsub.f32 0.0, %v1172_v51 }
 0x17c   : > { %v1146_v55 = vpop.f32.mrf.mxu2 }
 0x17d   : > { %v1204_v56 = vmul.f32 1.442695, %v1188_v53  ;;  %v4709_v57 = vadd.f32 %v4697_v45, %v1146_v55 }
 0x17e   : > { %v1118_v59 = vpop.f32.mrf.mxu0 }
 0x17f   : > { %3613 = vpow2.f32 %v1204_v56  ;;  %v4713_v60 = vadd.f32 %v4697_v45, %v1118_v59  ;;  %v1184_v61 = vand.u32 2147483647, %v4709_v57  ;;  %v1168_v41 = vmax.f32 %v4709_v57, 0.0 }
 0x181   : > { %v1173_v62 = vand.u32 2147483647, %v4713_v60  ;;  %v1200_v63 = vsub.f32 0.0, %v1184_v61  ;;  %v1157_v47 = vmax.f32 %v4713_v60, 0.0 }
 0x183   : > { %v1189_v1 = vsub.f32 0.0, %v1173_v62  ;;  %v1228_v2 = vmul.f32 1.442695, %v1200_v63  ;;  %v1538_v62 = vld [vmem:[%s5292_s26 + $0x8] sm:$0xff] }
 0x184   : > { %v1148_v3 = vpop.f32.mrf.mxu2  ;;  %1560 = vperm.xlu0 %3608, %v1538_v62  }
 0x185   : > { %v4718_v4 = vpop.eup %3613  ;;  %v1206_v5 = vmul.f32 1.442695, %v1189_v1  ;;  %3615 = vpow2.f32 %v1228_v2  ;;  %v4721_v6 = vadd.f32 %v4697_v45, %v1148_v3 }
 0x186   : > { %v1121_v7 = vpop.f32.mrf.mxu0  ;;  %v1236_v8 = vadd.f32 1.0, %v4718_v4  ;;  %v1239_v18 = vmul.f32 -0.5, %v4718_v4  ;;  %v1242_v35 = vand.u32 2147483647, %v4718_v4 }
 0x187   : > { %3617 = vpow2.f32 %v1206_v5  ;;  %v4726_v10 = vadd.f32 %v4697_v45, %v1121_v7  ;;  %v1185_v11 = vand.u32 2147483647, %v4721_v6  ;;  %v1169_v53 = vmax.f32 %v4721_v6, 0.0 }
 0x188   : > { %3619 = vlog2.f32 %v1236_v8  ;;  %v1240_v34 = vadd.f32 1.0, %v1239_v18  ;;  %vm4760_vm0 = vcmp.lt.f32.partialorder %v1242_v35, 0.0004427343 }
 0x189   : > { %v1174_v12 = vand.u32 2147483647, %v4726_v10  ;;  %v1201_v13 = vsub.f32 0.0, %v1185_v11  ;;  %v1158_v62 = vmax.f32 %v4726_v10, 0.0 }
 0x18a   : > { %v1241_v51 = vmul.f32 %v4718_v4, %v1240_v34 }
 0x18b   : > { %v4731_v15 = vpop.eup %3615  ;;  %v1190_v16 = vsub.f32 0.0, %v1174_v12  ;;  %v1230_v17 = vmul.f32 1.442695, %v1201_v13 }
 0x18c   : > { %v1151_v19 = vpop.f32.mrf.mxu2  ;;  %v1344_v20 = vadd.f32 1.0, %v4731_v15  ;;  %v1347_v36 = vmul.f32 -0.5, %v4731_v15  ;;  %v1350_v56 = vand.u32 2147483647, %v4731_v15 }
 0x18d   : > { %v3618_v21 = vpop.eup %3617  ;;  %v1208_v22 = vmul.f32 1.442695, %v1190_v16  ;;  %3621 = vpow2.f32 %v1230_v17  ;;  %v4736_v23 = vadd.f32 %v4697_v45, %v1151_v19 }
 0x18e   : > { %v3620_v26 = vpop.eup %3619  ;;  %v1123_v27 = vpop.f32.mrf.mxu0  ;;  %v1245_v28 = vadd.f32 1.0, %v3618_v21  ;;  %v1248_v29 = vmul.f32 -0.5, %v3618_v21  ;;  %3623 = vlog2.f32 %v1344_v20  ;;  %v1251_v43 = vand.u32 2147483647, %v3618_v21  ;;  %v4794_v20 = vld [vmem:[#allocation21 + $0x8] sm:$0xff] }
 0x18f   : > { %3625 = vpow2.f32 %v1208_v22  ;;  %v4746_v32 = vadd.f32 %v4697_v45, %v1123_v27  ;;  %v1186_v33 = vand.u32 2147483647, %v4736_v23  ;;  %v1238_v39 = vmul.f32 0.6931472, %v3620_v26 }
 0x190   : > { %3627 = vlog2.f32 %v1245_v28  ;;  %v1249_v42 = vadd.f32 1.0, %v1248_v29  ;;  %v1348_v49 = vadd.f32 1.0, %v1347_v36  ;;  %vm4775_vm1 = vcmp.lt.f32.partialorder %v1251_v43, 0.0004427343 }
 0x191   : > { %v1175_v37 = vand.u32 2147483647, %v4746_v32  ;;  %v1202_v38 = vsub.f32 0.0, %v1186_v33  ;;  %v1244_v61 = vsel %vm4760_vm0, %v1241_v51, %v1238_v39  ;;  %vm4798_vm2 = vcmp.lt.f32.partialorder %v1350_v56, 0.0004427343  ;;  %v1544_v51 = vld [vmem:[%s5292_s26 + $0x38] sm:$0xff] }
 0x192   : > { %v1250_v1 = vmul.f32 %v3618_v21, %v1249_v42  ;;  %v1380_v12 = vadd.f32 %v1244_v61, %v1156_v40  ;;  %v1349_v19 = vmul.f32 %v4731_v15, %v1348_v49  ;;  %v1681_v33 = vpack.c.bf16 %v4794_v20, %v4790_v14  ;;  %1590 = vperm.xlu1 %3609, %v1544_v51  }
 0x193   : > { %v4755_v46 = vpop.eup %3621  ;;  %v1191_v48 = vsub.f32 0.0, %v1175_v37  ;;  %v1232_v50 = vmul.f32 1.442695, %v1202_v38 }
 0x194   : > { %v3624_v52 = vpop.eup %3623  ;;  %v1153_v54 = vpop.f32.mrf.mxu2  ;;  %v1353_v4 = vadd.f32 1.0, %v4755_v46  ;;  %v1356_v8 = vmul.f32 -0.5, %v4755_v46  ;;  %v1359_v24 = vand.u32 2147483647, %v4755_v46  ;;  %v3124_v30 = vadd.f32 -0.6931472, %v1380_v12  ;;  %1741 = vmatmul.bf16.vlgmr.msrb.gmra.mxu2 %v1681_v33 }
 0x195   : > { %v4765_v58 = vpop.eup %3625  ;;  %v1210_v59 = vmul.f32 1.442695, %v1191_v48  ;;  %3629 = vpow2.f32 %v1232_v50  ;;  %v4768_v60 = vadd.f32 %v4697_v45, %v1153_v54  ;;  %v1346_v18 = vmul.f32 0.6931472, %v3624_v52  ;;  %v1543_v52 = vld [vmem:[%s5292_s26 + $0x30] sm:$0xff] }
 0x196   : > { %v3628_v63 = vpop.eup %3627  ;;  %v1126_v0 = vpop.f32.mrf.mxu0  ;;  %v1254_v3 = vadd.f32 1.0, %v4765_v58  ;;  %v1257_v13 = vmul.f32 -0.5, %v4765_v58  ;;  %v1357_v29 = vadd.f32 1.0, %v1356_v8  ;;  %v1260_v31 = vand.u32 2147483647, %v4765_v58  ;;  %1585 = vperm.xlu0 %3608, %v1543_v52  }
 0x197   : > { %3631 = vpow2.f32 %v1210_v59  ;;  %v4782_v5 = vadd.f32 %v4697_v45, %v1126_v0  ;;  %v1187_v7 = vand.u32 2147483647, %v4768_v60  ;;  %v1247_v11 = vmul.f32 0.6931472, %v3628_v63 }
 0x198   : > { %3633 = vlog2.f32 %v1254_v3  ;;  %v1258_v15 = vadd.f32 1.0, %v1257_v13  ;;  %v1352_v37 = vsel %vm4798_vm2, %v1349_v19, %v1346_v18  ;;  %vm4810_vm3 = vcmp.lt.f32.partialorder %v1359_v24, 0.0004427343  ;;  %v4853_v18 = vld [vmem:[#allocation21 + $0x10] sm:$0xff] }
 0x199   : > { %v1176_v16 = vand.u32 2147483647, %v4782_v5  ;;  %v1203_v17 = vsub.f32 0.0, %v1187_v7  ;;  %v1253_v21 = vsel %vm4775_vm1, %v1250_v1, %v1247_v11  ;;  %3635 = vlog2.f32 %v1353_v4  ;;  %v1547_v24 = vld [vmem:[%s5292_s26 + $0x50] sm:$0xff] }
 0x19a   : > { %v1381_v28 = vadd.f32 %v1253_v21, %v1157_v47  ;;  %v1358_v50 = vmul.f32 %v4755_v46, %v1357_v29  ;;  %v1392_v49 = vadd.f32 %v1352_v37, %v1168_v41  ;;  %v1159_v1 = vmax.f32 %v4746_v32, 0.0  ;;  %1605 = vperm.xlu1 %3609, %v1547_v24   ;;  %v4904_v24 = vld [vmem:[#allocation21 + $0x20] sm:$0xff] }
 0x19b   : > { %v4803_v25 = vpop.eup %3629  ;;  %v1192_v26 = vsub.f32 0.0, %v1176_v16  ;;  %v1234_v27 = vmul.f32 1.442695, %v1203_v17  ;;  %v1259_v57 = vmul.f32 %v4765_v58, %v1258_v15  ;;  %vm4836_vm4 = vcmp.lt.f32.partialorder %v1260_v31, 0.0004427343 }
 0x19c   : > { %v3125_v36 = vadd.f32 -0.6931472, %v1381_v28  ;;  %v1362_v44 = vadd.f32 1.0, %v4803_v25  ;;  %v1365_v56 = vmul.f32 -0.5, %v4803_v25  ;;  %v3136_v10 = vadd.f32 -0.6931472, %v1392_v49 }
 0x19d   : > { %v3632_v34 = vpop.eup %3631  ;;  %v1212_v35 = vmul.f32 1.442695, %v1192_v26  ;;  %3637 = vpow2.f32 %v1234_v27  ;;  %v1368_v11 = vand.u32 2147483647, %v4803_v25  ;;  %v1546_v26 = vld [vmem:[%s5292_s26 + $0x48] sm:$0xff]  ;;  %v4865_v27 = vld [vmem:[#allocation21 + $0x18] sm:$0xff] }
 0x19e   : > { %v3634_v38 = vpop.eup %3633  ;;  %v1128_v39 = vpop.f32.mrf.mxu0  ;;  %v1263_v40 = vadd.f32 1.0, %v3632_v34  ;;  %v1266_v42 = vmul.f32 -0.5, %v3632_v34  ;;  %v1428_v48 = vpack.c.bf16 %v3125_v36, %v3124_v30  ;;  %v1269_v55 = vand.u32 2147483647, %v3632_v34  ;;  %1600 = vperm.xlu0 %3608, %v1546_v26  }
 0x19f   : > { %3639 = vpow2.f32 %v1212_v35  ;;  %v4816_v47 = vadd.f32 %v4697_v45, %v1128_v39  ;;  %v3636_v54 = vpop.eup %3635  ;;  %v1256_v59 = vmul.f32 0.6931472, %v3634_v38  ;;  %v1366_v7 = vadd.f32 1.0, %v1365_v56 }
 0x1a0   : > { %3641 = vlog2.f32 %v1263_v40  ;;  %1496 = vmatmul.bf16.vlgmr.msra.gmra.mxu1 %v1428_v48  ;;  %v1355_v61 = vmul.f32 0.6931472, %v3636_v54  ;;  %v1267_v63 = vadd.f32 1.0, %v1266_v42  ;;  %vm4846_vm5 = vcmp.lt.f32.partialorder %v1269_v55, 0.0004427343 }
 0x1a1   : > { %v1177_v46 = vand.u32 2147483647, %v4816_v47  ;;  %3643 = vlog2.f32 %v1362_v44  ;;  %v1262_v32 = vsel %vm4836_vm4, %v1259_v57, %v1256_v59  ;;  %v1367_v15 = vmul.f32 %v4803_v25, %v1366_v7  ;;  %v1549_v59 = vld [vmem:[%s5292_s26 + $0x60] sm:$0xff] }
 0x1a2   : > { %v1361_v41 = vsel %vm4810_vm3, %v1358_v50, %v1355_v61  ;;  %v1268_v16 = vmul.f32 %v3632_v34, %v1267_v63  ;;  %v1382_v29 = vadd.f32 %v1262_v32, %v1158_v62  ;;  %vm4871_vm6 = vcmp.lt.f32.partialorder %v1368_v11, 0.0004427343 }
 0x1a3   : > { %v4830_v0 = vpop.eup %3637  ;;  %v1193_v2 = vsub.f32 0.0, %v1177_v46  ;;  %v1393_v4 = vadd.f32 %v1361_v41, %v1169_v53  ;;  %v1682_v25 = vpack.c.bf16 %v4865_v27, %v4853_v18  ;;  %v1170_v38 = vmax.f32 %v4736_v23, 0.0  ;;  %v1550_v23 = vld [vmem:[%s5292_s26 + $0x68] sm:$0xff] }
 0x1a4   : > { %v1371_v53 = vadd.f32 1.0, %v4830_v0  ;;  %v1374_v22 = vmul.f32 -0.5, %v4830_v0  ;;  %v3126_v42 = vadd.f32 -0.6931472, %v1382_v29  ;;  %v1377_v44 = vand.u32 2147483647, %v4830_v0  ;;  %1620 = vperm.xlu1 %3609, %v1550_v23  }
 0x1a5   : > { %v4842_v8 = vpop.eup %3639  ;;  %v1214_v9 = vmul.f32 1.442695, %v1193_v2  ;;  %v3137_v17 = vadd.f32 -0.6931472, %v1393_v4  ;;  %v1171_v54 = vmax.f32 %v4768_v60, 0.0  ;;  %1746 = vmatmul.bf16.gmra.mxu2 %v1682_v25 }
 0x1a6   : > { %v3642_v12 = vpop.eup %3641  ;;  %v1131_v13 = vpop.f32.mrf.mxu0  ;;  %v1272_v6 = vadd.f32 1.0, %v4842_v8  ;;  %v1275_v37 = vmul.f32 -0.5, %v4842_v8  ;;  %v1375_v40 = vadd.f32 1.0, %v1374_v22  ;;  %vm1378_vm7 = vcmp.lt.f32.partialorder %v1377_v44, 0.0004427343  ;;  %1615 = vperm.xlu0 %3608, %v1549_v59  }
 0x1a7   : > { %3645 = vpow2.f32 %v1214_v9  ;;  %v4856_v19 = vadd.f32 %v4697_v45, %v1131_v13  ;;  %v1265_v21 = vmul.f32 0.6931472, %v3642_v12  ;;  %v3644_v28 = vpop.eup %3643  ;;  %v1434_v30 = vpack.c.bf16 %v3137_v17, %v3136_v10 }
 0x1a8   : > { %3647 = vlog2.f32 %v1272_v6  ;;  %v1364_v34 = vmul.f32 0.6931472, %v3644_v28  ;;  %v1276_v56 = vadd.f32 1.0, %v1275_v37  ;;  %v1376_v60 = vmul.f32 %v4830_v0, %v1375_v40 }
 0x1a9   : > { %v1178_v31 = vand.u32 2147483647, %v4856_v19  ;;  %v1271_v33 = vsel %vm4846_vm5, %v1268_v16, %v1265_v21  ;;  %1526 = vmatmul.bf16.vlgmr.msra.gmra.mxu3 %v1434_v30  ;;  %3649 = vlog2.f32 %v1371_v53  ;;  %v1160_v6 = vmax.f32 %v4782_v5, 0.0  ;;  %v1541_v30 = vld [vmem:[%s5292_s26 + $0x20] sm:$0xff]  ;;  %v1552_v5 = vld [vmem:[%s5292_s26 + $0x78] sm:$0xff] }
 0x1aa   : > { %v1383_v36 = vadd.f32 %v1271_v33, %v1159_v1  ;;  %v1370_v51 = vsel %vm4871_vm6, %v1367_v15, %v1364_v34  ;;  %v1278_v1 = vand.u32 2147483647, %v4842_v8  ;;  %v1277_v10 = vmul.f32 %v4842_v8, %v1276_v56  ;;  %v4912_v15 = vld [vmem:[#allocation21 + $0x28] sm:$0xff]  ;;  %1575 = vperm.xlu2 %3610, %v1541_v30  }
 0x1ab   : > { %v1194_v39 = vsub.f32 0.0, %v1178_v31  ;;  %v1394_v2 = vadd.f32 %v1370_v51, %v1170_v38  ;;  %v1161_v53 = vmax.f32 %v4816_v47, 0.0 }
 0x1ac   : > { %v3127_v43 = vadd.f32 -0.6931472, %v1383_v36  ;;  %vm4896_vm8 = vcmp.lt.f32.partialorder %v1278_v1, 0.0004427343  ;;  %v1683_v36 = vpack.c.bf16 %v4912_v15, %v4904_v24 }
 0x1ad   : > { %v3646_v48 = vpop.eup %3645  ;;  %v1216_v50 = vmul.f32 1.442695, %v1194_v39  ;;  %v3138_v11 = vadd.f32 -0.6931472, %v1394_v2 }
 0x1ae   : > { %v3648_v52 = vpop.eup %3647  ;;  %v1133_v55 = vpop.f32.mrf.mxu0  ;;  %v1429_v49 = vpack.c.bf16 %v3127_v43, %v3126_v42  ;;  %v1281_v46 = vadd.f32 1.0, %v3646_v48  ;;  %v1284_v62 = vmul.f32 -0.5, %v3646_v48  ;;  %v1287_v32 = vand.u32 2147483647, %v3646_v48  ;;  %1630 = vperm.xlu0 %3608, %v1552_v5   ;;  %v1542_v43 = vld [vmem:[%s5292_s26 + $0x28] sm:$0xff] }
 0x1af   : > { %3651 = vpow2.f32 %v1216_v50  ;;  %v4890_v61 = vadd.f32 %v4697_v45, %v1133_v55  ;;  %v3650_v63 = vpop.eup %3649  ;;  %v1274_v41 = vmul.f32 0.6931472, %v3648_v52 }
 0x1b0   : > { %3653 = vlog2.f32 %v1281_v46  ;;  %1501 = vmatmul.bf16.gmra.mxu1 %v1429_v49  ;;  %v1373_v3 = vmul.f32 0.6931472, %v3650_v63  ;;  %v1285_v7 = vadd.f32 1.0, %v1284_v62  ;;  %vm1288_vm9 = vcmp.lt.f32.partialorder %v1287_v32, 0.0004427343 }
 0x1b1   : > { %v1179_v57 = vand.u32 2147483647, %v4890_v61  ;;  %v1280_v16 = vsel %vm4896_vm8, %v1277_v10, %v1274_v41  ;;  %v1545_v41 = vld [vmem:[%s5292_s26 + $0x40] sm:$0xff] }
 0x1b2   : > { %v1379_v9 = vsel %vm1378_vm7, %v1376_v60, %v1373_v3  ;;  %v1286_v29 = vmul.f32 %v3646_v48, %v1285_v7  ;;  %v1384_v47 = vadd.f32 %v1280_v16, %v1160_v6  ;;  %1580 = vperm.xlu2 %3610, %v1542_v43  }
 0x1b3   : > { %v1195_v4 = vsub.f32 0.0, %v1179_v57  ;;  %v1395_v58 = vadd.f32 %v1379_v9, %v1171_v54 }
 0x1b4   : > { %v3128_v38 = vadd.f32 -0.6931472, %v1384_v47 }
 0x1b5   : > { %v3652_v12 = vpop.eup %3651  ;;  %v1218_v13 = vmul.f32 1.442695, %v1195_v4  ;;  %v3139_v21 = vadd.f32 -0.6931472, %v1395_v58  ;;  %1751 = vmatmul.bf16.gmra.mxu2 %v1683_v36  ;;  %v1162_v4 = vmax.f32 %v4856_v19, 0.0  ;;  %v4940_v58 = vld [vmem:[#allocation21 + $0x30] sm:$0xff] }
 0x1b6   : > { %v3654_v17 = vpop.eup %3653  ;;  %v1136_v8 = vpop.f32.mrf.mxu0  ;;  %v1290_v22 = vadd.f32 1.0, %v3652_v12  ;;  %v1293_v25 = vmul.f32 -0.5, %v3652_v12  ;;  %v1296_v49 = vand.u32 2147483647, %v3652_v12 }
 0x1b7   : > { %3655 = vpow2.f32 %v1218_v13  ;;  %v4907_v26 = vadd.f32 %v4697_v45, %v1136_v8  ;;  %v1283_v28 = vmul.f32 0.6931472, %v3654_v17  ;;  %v1435_v31 = vpack.c.bf16 %v3139_v21, %v3138_v11  ;;  %v4942_v11 = vld [vmem:[#allocation21 + $0x38] sm:$0xff] }
 0x1b8   : > { %3657 = vlog2.f32 %v1290_v22  ;;  %v1294_v54 = vadd.f32 1.0, %v1293_v25  ;;  %vm4927_vm10 = vcmp.lt.f32.partialorder %v1296_v49, 0.0004427343  ;;  %v1684_v6 = vpack.c.bf16 %v4942_v11, %v4940_v58 }
 0x1b9   : > { %v1180_v33 = vand.u32 2147483647, %v4907_v26  ;;  %v1289_v34 = vsel %vm1288_vm9, %v1286_v29, %v1283_v28  ;;  %1531 = vmatmul.bf16.gmra.mxu3 %v1435_v31 }
 0x1ba   : > { %v1385_v35 = vadd.f32 %v1289_v34, %v1161_v53  ;;  %v1295_v59 = vmul.f32 %v3652_v12, %v1294_v54  ;;  %v1163_v12 = vmax.f32 %v4890_v61, 0.0  ;;  %1595 = vperm.xlu2 %3610, %v1545_v41   ;;  %v1548_v61 = vld [vmem:[%s5292_s26 + $0x58] sm:$0xff] }
 0x1bb   : > { %v1196_v37 = vsub.f32 0.0, %v1180_v33 }
 0x1bc   : > { %v3129_v39 = vadd.f32 -0.6931472, %v1385_v35 }
 0x1bd   : > { %v3656_v40 = vpop.eup %3655  ;;  %v1220_v42 = vmul.f32 1.442695, %v1196_v37 }
 0x1be   : > { %v3658_v44 = vpop.eup %3657  ;;  %v1138_v48 = vpop.f32.mrf.mxu0  ;;  %v1430_v50 = vpack.c.bf16 %v3129_v39, %v3128_v38  ;;  %v1299_v51 = vadd.f32 1.0, %v3656_v40  ;;  %v1302_v55 = vmul.f32 -0.5, %v3656_v40  ;;  %v1305_v63 = vand.u32 2147483647, %v3656_v40 }
 0x1bf   : > { %3659 = vpow2.f32 %v1220_v42  ;;  %v4924_v52 = vadd.f32 %v4697_v45, %v1138_v48  ;;  %v1292_v46 = vmul.f32 0.6931472, %v3658_v44 }
 0x1c0   : > { %3661 = vlog2.f32 %v1299_v51  ;;  %1506 = vmatmul.bf16.gmra.mxu1 %v1430_v50  ;;  %v1303_v62 = vadd.f32 1.0, %v1302_v55  ;;  %vm1306_vm11 = vcmp.lt.f32.partialorder %v1305_v63, 0.0004427343  ;;  %v1164_v51 = vmax.f32 %v4907_v26, 0.0 }
 0x1c1   : > { %v1181_v56 = vand.u32 2147483647, %v4924_v52  ;;  %v1298_v57 = vsel %vm4927_vm10, %v1295_v59, %v1292_v46 }
 0x1c2   : > { %v1304_v32 = vmul.f32 %v3656_v40, %v1303_v62  ;;  %v1386_v13 = vadd.f32 %v1298_v57, %v1162_v4  ;;  %1610 = vperm.xlu2 %3610, %v1548_v61   ;;  %v1566_v61 = vpop.permute.xlu1 %1565 }
 0x1c3   : > { %v1197_v23 = vsub.f32 0.0, %v1181_v56  ;;  %v1165_v56 = vmax.f32 %v4924_v52, 0.0 }
 0x1c4   : > { %v3130_v21 = vadd.f32 -0.6931472, %v1386_v13 }
 0x1c5   : > { %v3660_v1 = vpop.eup %3659  ;;  %v1222_v2 = vmul.f32 1.442695, %v1197_v23  ;;  %1756 = vmatmul.bf16.gmra.mxu2 %v1684_v6 }
 0x1c6   : > { %v3662_v3 = vpop.eup %3661  ;;  %v1141_v10 = vpop.f32.mrf.mxu0  ;;  %v1308_v7 = vadd.f32 1.0, %v3660_v1  ;;  %v1311_v8 = vmul.f32 -0.5, %v3660_v1  ;;  %v1314_v36 = vand.u32 2147483647, %v3660_v1 }
 0x1c7   : > { %3663 = vpow2.f32 %v1222_v2  ;;  %v4938_v9 = vadd.f32 %v4697_v45, %v1141_v10  ;;  %v1301_v0 = vmul.f32 0.6931472, %v3662_v3 }
 0x1c8   : > { %3665 = vlog2.f32 %v1308_v7  ;;  %v1312_v34 = vadd.f32 1.0, %v1311_v8  ;;  %vm1315_vm12 = vcmp.lt.f32.partialorder %v1314_v36, 0.0004427343 }
 0x1c9   : > { %v1182_v19 = vand.u32 2147483647, %v4938_v9  ;;  %v1307_v16 = vsel %vm1306_vm11, %v1304_v32, %v1301_v0  ;;  %v1166_v13 = vmax.f32 %v4938_v9, 0.0  ;;  %v4965_v9 = vld [vmem:[%s974_s22] ss:$0 sm:$0xff]  ;;  %s4187_s22 = smov 0  }
 0x1ca   : > { %v1387_v17 = vadd.f32 %v1307_v16, %v1163_v12  ;;  %v1313_v39 = vmul.f32 %v3660_v1, %v1312_v34 }
 0x1cb   : > { %v1198_v53 = vsub.f32 0.0, %v1182_v19 }
 0x1cc   : > { %v3131_v22 = vadd.f32 -0.6931472, %v1387_v17 }
 0x1cd   : > { %v3664_v28 = vpop.eup %3663  ;;  %v1224_v29 = vmul.f32 1.442695, %v1198_v53 }
 0x1ce   : > { %v3666_v30 = vpop.eup %3665  ;;  %v1143_v5 = vpop.f32.mrf.mxu0  ;;  %v1431_v47 = vpack.c.bf16 %v3131_v22, %v3130_v21  ;;  %v1317_v31 = vadd.f32 1.0, %v3664_v28  ;;  %v1320_v35 = vmul.f32 -0.5, %v3664_v28  ;;  %v1323_v42 = vand.u32 2147483647, %v3664_v28 }
 0x1cf   : > { %3667 = vpow2.f32 %v1224_v29  ;;  %v1144_v33 = vadd.f32 %v4697_v45, %v1143_v5  ;;  %v1310_v25 = vmul.f32 0.6931472, %v3666_v30  ;;  %v1551_v45 = vld [vmem:[%s5292_s26 + $0x70] sm:$0xff]  ;;  %v1556_v29 = vpop.permute.xlu0 %1555 }
 0x1d0   : > { %3669 = vlog2.f32 %v1317_v31  ;;  %1511 = vmatmul.bf16.gmra.mxu1 %v1431_v47  ;;  %v1321_v40 = vadd.f32 1.0, %v1320_v35  ;;  %vm1324_vm13 = vcmp.lt.f32.partialorder %v1323_v42, 0.0004427343  ;;  %1625 = vperm.xlu2 %3610, %v1551_v45   ;;  %v1571_v47 = vpop.permute.xlu1 %1570 }
 0x1d1   : > { %v1183_v37 = vand.u32 2147483647, %v1144_v33  ;;  %v1316_v48 = vsel %vm1315_vm12, %v1313_v39, %v1310_v25  ;;  %v1167_v17 = vmax.f32 %v1144_v33, 0.0 }
 0x1d2   : > { %v1322_v49 = vmul.f32 %v3664_v28, %v1321_v40  ;;  %v1388_v46 = vadd.f32 %v1316_v48, %v1164_v51 }
 0x1d3   : > { %v1199_v38 = vsub.f32 0.0, %v1183_v37 }
 0x1d4   : > { %v3132_v60 = vadd.f32 -0.6931472, %v1388_v46 }
 0x1d5   : > { %v3668_v43 = vpop.eup %3667  ;;  %v1226_v44 = vmul.f32 1.442695, %v1199_v38 }
 0x1d6   : > { %v3670_v50 = vpop.eup %3669  ;;  %v1326_v54 = vadd.f32 1.0, %v3668_v43  ;;  %v1329_v62 = vmul.f32 -0.5, %v3668_v43  ;;  %v1332_v4 = vand.u32 2147483647, %v3668_v43 }
 0x1d7   : > { %3671 = vpow2.f32 %v1226_v44  ;;  %v1319_v55 = vmul.f32 0.6931472, %v3670_v50 }
 0x1d8   : > { %3673 = vlog2.f32 %v1326_v54  ;;  %v1330_v26 = vadd.f32 1.0, %v1329_v62  ;;  %vm1333_vm14 = vcmp.lt.f32.partialorder %v1332_v4, 0.0004427343 }
 0x1d9   : > { %v1325_v23 = vsel %vm1324_vm13, %v1322_v49, %v1319_v55 }
 0x1da   : > { %v1389_v59 = vadd.f32 %v1325_v23, %v1165_v56  ;;  %v1331_v52 = vmul.f32 %v3668_v43, %v1330_v26 }
 0x1dc   : > { %v3133_v63 = vadd.f32 -0.6931472, %v1389_v59 }
 0x1dd   : > { %v3672_v1 = vpop.eup %3671 }
 0x1de   : > { %v3674_v2 = vpop.eup %3673  ;;  %v1432_v57 = vpack.c.bf16 %v3133_v63, %v3132_v60  ;;  %v1335_v41 = vadd.f32 1.0, %v3672_v1  ;;  %v1338_v3 = vmul.f32 -0.5, %v3672_v1  ;;  %v1341_v0 = vand.u32 2147483647, %v3672_v1 }
 0x1df   : > { %v1328_v10 = vmul.f32 0.6931472, %v3674_v2 }
 0x1e0   : > { %3675 = vlog2.f32 %v1335_v41  ;;  %1516 = vmatmul.bf16.gmra.mxu1 %v1432_v57  ;;  %v1339_v7 = vadd.f32 1.0, %v1338_v3  ;;  %vm1342_vm15 = vcmp.lt.f32.partialorder %v1341_v0, 0.0004427343 }
 0x1e1   : > { %v1334_v32 = vsel %vm1333_vm14, %v1331_v52, %v1328_v10 }
 0x1e2   : > { %v1340_v16 = vmul.f32 %v3672_v1, %v1339_v7  ;;  %v1390_v6 = vadd.f32 %v1334_v32, %v1166_v13 }
 0x1e4   : > { %v3134_v21 = vadd.f32 -0.6931472, %v1390_v6 }
 0x1e6   : > { %v3676_v12 = vpop.eup %3675 }
 0x1e7   : > { %v1337_v19 = vmul.f32 0.6931472, %v3676_v12 }
 0x1e9   : > { %v1343_v53 = vsel %vm1342_vm15, %v1340_v16, %v1337_v19 }
 0x1ea   : > { %v1391_v8 = vadd.f32 %v1343_v53, %v1167_v17 }
 0x1ec   : > { %v3135_v22 = vadd.f32 -0.6931472, %v1391_v8 }
 0x1ee   : > { %v1433_v28 = vpack.c.bf16 %v3135_v22, %v3134_v21 }
 0x1f0   : > { %1521 = vmatmul.bf16.gmra.mxu1 %v1433_v28 }
 0x1f6   : > { %v1561_v30 = vpop.permute.xlu0 %1560 }
 0x204   : > { %v1576_v5 = vpop.permute.xlu2 %1575  ;;  %v4968_v37 = vpop.permute.xlu1 %1590 }
 0x208   : > { %v4958_v31 = vpop.permute.xlu0 %1585 }
 0x20c   : > { %v1581_v35 = vpop.permute.xlu2 %1580  ;;  %v4975_v48 = vpop.permute.xlu1 %1605 }
 0x210   : > { %v4970_v38 = vpop.permute.xlu0 %1600 }
 0x214   : > { %v4973_v43 = vpop.permute.xlu2 %1595 }
 0x216   : > { %v1621_v62 = vpop.permute.xlu1 %1620 }
 0x217   : > { %v1742_v25 = vpop.f32.mrf.mxu2 }
 0x218   : > { %1762 = vst [vmem:[#allocation3] sm:$0xff] %v1742_v25  ;;  %v1616_v50 = vpop.permute.xlu0 %1615 }
 0x21c   : > { %v4979_v23 = vpop.permute.xlu2 %1610 }
 0x21d   : > { %v1497_v33 = vpop.f32.mrf.mxu1 }
 0x21e   : > { %v1498_v34 = vadd.f32 %v4965_v9, %v1497_v33  ;;  %v4204_v33 = vmov 0.0  }
 0x21f   : > { %v1744_v44 = vpop.f32.mrf.mxu2  ;;  %1770 = vst [vmem:[#allocation4] sm:$0xff] %v4204_v33 }
 0x220   : > { %v1633_v36 = vmul.f32 %v1556_v29, %v1498_v34  ;;  %1763 = vst [vmem:[#allocation3 + $0x8] sm:$0xff] %v1744_v44  ;;  %v1631_v13 = vpop.permute.xlu0 %1630 }
 0x221   : > { %1771 = vst [vmem:[#allocation4 + $0x8] sm:$0xff] %v4204_v33 }
 0x222   : > { %1649 = vst [vmem:[#allocation2] sm:$0xff] %v1633_v36 }
 0x223   : > { %1772 = vst [vmem:[#allocation4 + $0x10] sm:$0xff] %v4204_v33 }
 0x224   : > { %1773 = vst [vmem:[#allocation4 + $0x18] sm:$0xff] %v4204_v33 }
 0x225   : > { %v1499_v39 = vpop.f32.mrf.mxu1  ;;  %1774 = vst [vmem:[#allocation4 + $0x20] sm:$0xff] %v4204_v33 }
 0x226   : > { %v1500_v40 = vadd.f32 %v4965_v9, %v1499_v39  ;;  %1775 = vst [vmem:[#allocation4 + $0x28] sm:$0xff] %v4204_v33 }
 0x227   : > { %1776 = vst [vmem:[#allocation4 + $0x30] sm:$0xff] %v4204_v33 }
 0x228   : > { %v1634_v42 = vmul.f32 %v1561_v30, %v1500_v40  ;;  %v1747_v46 = vpop.f32.mrf.mxu2  ;;  %1777 = vst [vmem:[#allocation4 + $0x38] sm:$0xff] %v4204_v33 }
 0x229   : > { %1764 = vst [vmem:[#allocation3 + $0x10] sm:$0xff] %v1747_v46 }
 0x22a   : > { %1650 = vst [vmem:[#allocation2 + $0x8] sm:$0xff] %v1634_v42  ;;  %v1626_v3 = vpop.permute.xlu2 %1625 }
 0x22c   : > { %v1527_v45 = vpop.f32.mrf.mxu3 }
 0x22d   : > { %v1502_v51 = vpop.f32.mrf.mxu1  ;;  %v1528_v54 = vadd.f32 %v4965_v9, %v1527_v45 }
 0x22e   : > { %v1503_v55 = vadd.f32 %v4965_v9, %v1502_v51 }
 0x22f   : > { %v1645_v49 = vmul.f32 %v1616_v50, %v1528_v54 }
 0x230   : > { %v1635_v56 = vmul.f32 %v1566_v61, %v1503_v55  ;;  %v1749_v41 = vpop.f32.mrf.mxu2 }
 0x231   : > { %1661 = vst [vmem:[#allocation2 + $0x60] sm:$0xff] %v1645_v49 }
 0x232   : > { %1651 = vst [vmem:[#allocation2 + $0x10] sm:$0xff] %v1635_v56 }
 0x233   : > { %1765 = vst [vmem:[#allocation3 + $0x18] sm:$0xff] %v1749_v41 }
 0x234   : > { %v1529_v59 = vpop.f32.mrf.mxu3 }
 0x235   : > { %v1504_v60 = vpop.f32.mrf.mxu1  ;;  %v1530_v63 = vadd.f32 %v4965_v9, %v1529_v59 }
 0x236   : > { %v1505_v1 = vadd.f32 %v4965_v9, %v1504_v60 }
 0x237   : > { %v1646_v2 = vmul.f32 %v1621_v62, %v1530_v63 }
 0x238   : > { %v1636_v57 = vmul.f32 %v1571_v47, %v1505_v1  ;;  %v1752_v32 = vpop.f32.mrf.mxu2 }
 0x239   : > { %1662 = vst [vmem:[#allocation2 + $0x68] sm:$0xff] %v1646_v2 }
 0x23a   : > { %1652 = vst [vmem:[#allocation2 + $0x18] sm:$0xff] %v1636_v57 }
 0x23b   : > { %1766 = vst [vmem:[#allocation3 + $0x20] sm:$0xff] %v1752_v32 }
 0x23c   : > { %v1532_v26 = vpop.f32.mrf.mxu3 }
 0x23d   : > { %v1507_v4 = vpop.f32.mrf.mxu1  ;;  %v1533_v10 = vadd.f32 %v4965_v9, %v1532_v26 }
 0x23e   : > { %v1508_v52 = vadd.f32 %v4965_v9, %v1507_v4 }
 0x23f   : > { %v1647_v7 = vmul.f32 %v1626_v3, %v1533_v10 }
 0x240   : > { %v1637_v0 = vmul.f32 %v1576_v5, %v1508_v52  ;;  %v1754_v8 = vpop.f32.mrf.mxu2 }
 0x241   : > { %1663 = vst [vmem:[#allocation2 + $0x70] sm:$0xff] %v1647_v7 }
 0x242   : > { %1653 = vst [vmem:[#allocation2 + $0x20] sm:$0xff] %v1637_v0 }
 0x243   : > { %1767 = vst [vmem:[#allocation3 + $0x28] sm:$0xff] %v1754_v8 }
 0x244   : > { %v1534_v12 = vpop.f32.mrf.mxu3 }
 0x245   : > { %v1509_v19 = vpop.f32.mrf.mxu1  ;;  %v1535_v16 = vadd.f32 %v4965_v9, %v1534_v12 }
 0x246   : > { %v1510_v17 = vadd.f32 %v4965_v9, %v1509_v19 }
 0x247   : > { %v1648_v6 = vmul.f32 %v1631_v13, %v1535_v16 }
 0x248   : > { %v1638_v53 = vmul.f32 %v1581_v35, %v1510_v17  ;;  %v1757_v29 = vpop.f32.mrf.mxu2 }
 0x249   : > { %1664 = vst [vmem:[#allocation2 + $0x78] sm:$0xff] %v1648_v6 }
 0x24a   : > { %1654 = vst [vmem:[#allocation2 + $0x28] sm:$0xff] %v1638_v53 }
 0x24b   : > { %1768 = vst [vmem:[#allocation3 + $0x30] sm:$0xff] %v1757_v29 }
 0x24d   : > { %v1512_v21 = vpop.f32.mrf.mxu1 }
 0x24e   : > { %v1513_v22 = vadd.f32 %v4965_v9, %v1512_v21 }
 0x250   : > { %v1639_v28 = vmul.f32 %v4958_v31, %v1513_v22  ;;  %v1759_v47 = vpop.f32.mrf.mxu2 }
 0x251   : > { %1769 = vst [vmem:[#allocation3 + $0x38] sm:$0xff] %v1759_v47 }
 0x252   : > { %1655 = vst [vmem:[#allocation2 + $0x30] sm:$0xff] %v1639_v28 }
 0x255   : > { %v1514_v61 = vpop.f32.mrf.mxu1 }
 0x256   : > { %v1515_v30 = vadd.f32 %v4965_v9, %v1514_v61 }
 0x258   : > { %v1640_v5 = vmul.f32 %v4968_v37, %v1515_v30 }
 0x25a   : > { %1656 = vst [vmem:[#allocation2 + $0x38] sm:$0xff] %v1640_v5 }
 0x25d   : > { %v1517_v34 = vpop.f32.mrf.mxu1 }
 0x25e   : > { %v1518_v31 = vadd.f32 %v4965_v9, %v1517_v34 }
 0x260   : > { %v1641_v35 = vmul.f32 %v4973_v43, %v1518_v31 }
 0x262   : > { %1657 = vst [vmem:[#allocation2 + $0x40] sm:$0xff] %v1641_v35 }
 0x265   : > { %v1519_v36 = vpop.f32.mrf.mxu1 }
 0x266   : > { %v1520_v37 = vadd.f32 %v4965_v9, %v1519_v36 }
 0x268   : > { %v1642_v25 = vmul.f32 %v4970_v38, %v1520_v37 }
 0x26a   : > { %1658 = vst [vmem:[#allocation2 + $0x48] sm:$0xff] %v1642_v25 }
 0x26d   : > { %v1522_v39 = vpop.f32.mrf.mxu1 }
 0x26e   : > { %v1523_v40 = vadd.f32 %v4965_v9, %v1522_v39 }
 0x270   : > { %v1643_v42 = vmul.f32 %v4975_v48, %v1523_v40 }
 0x272   : > { %1659 = vst [vmem:[#allocation2 + $0x50] sm:$0xff] %v1643_v42 }
 0x275   : > { %v1524_v43 = vpop.f32.mrf.mxu1 }
 0x276   : > { %v1525_v44 = vadd.f32 %v4965_v9, %v1524_v43 }
 0x278   : > { %v1644_v45 = vmul.f32 %v4979_v23, %v1525_v44 }
 0x27a   : > { %1660 = vst [vmem:[#allocation2 + $0x58] sm:$0xff] %v1644_v45 }
 0x27b LB: >> { %s1784_s17 = sld [smem:[#allocation6 + %s4189_s22]]  ;;  %s1788_s20 = scalar_lea.vmem [#allocation2], %s4189_s22  ;;  %s4189_s22 = sphi %s4187_s22, %s1783_s22  }
 0x27c   : >> { %s1785_s25 = sld [smem:[#allocation7 + %s4189_s22]]  ;;  %s1783_s22 = sadd.s32 1, %s4189_s22  }
 0x27d   : >> { %p1780_p5 = scmp.ge.s32.totalorder %s1783_s22, 128  }
 0x27e   : > { %v3431_v9 = vld [vmem:[%s4619_s12 + $0x38] sm:$0xff] (%p1780_p5)  ;;  %v3430_v49 = vld [vmem:[%s4619_s12 + $0x30] sm:$0xff] (%p1780_p5)  ;;  %v3429_v23 = vld [vmem:[%s4619_s12 + $0x28] sm:$0xff] (%p1780_p5) }
 0x27f   : > { %v3439_v55 = vld [vmem:[%s4627_s3 + $0x38] sm:$0xff] (%p1780_p5)  ;;  %1875 = vmatpush.bf16.msrb.mxu3 (%p1780_p5), %v3431_v9  ;;  %v3438_v56 = vld [vmem:[%s4627_s3 + $0x30] sm:$0xff] (%p1780_p5)  ;;  %v3437_v59 = vld [vmem:[%s4627_s3 + $0x28] sm:$0xff] (%p1780_p5) }
 0x280   : > { %1984 = vmatpush.bf16.msra.mxu2 (%p1780_p5), %v3439_v55  ;;  %v3428_v1 = vld [vmem:[%s4619_s12 + $0x20] sm:$0xff] (%p1780_p5)  ;;  %v3427_v57 = vld [vmem:[%s4619_s12 + $0x18] sm:$0xff] (%p1780_p5)  ;;  %v3426_v3 = vld [vmem:[%s4619_s12 + $0x10] sm:$0xff] (%p1780_p5) }
 0x281   : >> { %v1789_v38 = vld [vmem:[%s1788_s20] sm:$0x1]  ;;  %s1786_s19 = scalar_lea.vmem [#allocation3], %s1784_s17  ;;  %v3435_v41 = vld [vmem:[%s4627_s3 + $0x18] sm:$0xff] (%p1780_p5)  ;;  %v3434_v4 = vld [vmem:[%s4627_s3 + $0x10] sm:$0xff] (%p1780_p5) }
 0x282   : >> { %v1787_v50 = vld [vmem:[%s1786_s19] sm:$0x1]  ;;  %s1791_s27 = scalar_lea.vmem [#allocation4], %s1785_s25  ;;  %v3425_v52 = vld [vmem:[%s4619_s12 + $0x8] sm:$0xff] (%p1780_p5)  ;;  %v1906_v53 = vld [vmem:[#allocation11 + $0x10] sm:$0xff] (%p1780_p5) }
 0x283   : >> { %v1790_v51 = vmul.f32 %v1789_v38, %v1787_v50  ;;  %v1792_v48 = vld [vmem:[%s1791_s27] sm:$0x1]  ;;  %1782 = sbr.rel (!%p1780_p5) target bundleno = 635 (0x27b), region = 255  ;;  %1876 = vmatpush.bf16.msrb.mxu3 (%p1780_p5), %v3430_v49  ;;  %v3433_v7 = vld [vmem:[%s4627_s3 + $0x8] sm:$0xff] (%p1780_p5)  ;;  %v1907_v8 = vld [vmem:[#allocation11 + $0x18] sm:$0xff] (%p1780_p5) }
 0x284   : > { %1985 = vmatpush.bf16.msra.mxu2 (%p1780_p5), %v3438_v56  ;;  %v3436_v2 = vld [vmem:[%s4627_s3 + $0x20] sm:$0xff] (%p1780_p5)  ;;  %v1905_v13 = vld [vmem:[#allocation11 + $0x8] sm:$0xff] (%p1780_p5)  ;;  %v1929_v22 = vpack.c.bf16 (%p1780_p5), %v1907_v8, %v1906_v53  ;;  %v3447_v28 = vld [vmem:[%s4621_s21 + $0x38] sm:$0xff] (%p1780_p5) }
 0x285   : >> { %v1793_v54 = vadd.f32 %v1792_v48, %v1790_v51  ;;  %v3424_v0 = vld [vmem:[%s4619_s12] sm:$0xff] (%p1780_p5)  ;;  %v3446_v29 = vld [vmem:[%s4621_s21 + $0x30] sm:$0xff] (%p1780_p5)  ;;  %v3445_v61 = vld [vmem:[%s4621_s21 + $0x28] sm:$0xff] (%p1780_p5) }
 0x286   : > { %v3432_v32 = vld [vmem:[%s4627_s3] sm:$0xff] (%p1780_p5)  ;;  %v1909_v5 = vld [vmem:[#allocation11 + $0x28] sm:$0xff] (%p1780_p5)  ;;  %v1910_v34 = vld [vmem:[#allocation11 + $0x30] sm:$0xff] (%p1780_p5) }
 0x287   : >> { %1794 = vst [vmem:[%s1791_s27] sm:$0x1] %v1793_v54  ;;  %1877 = vmatpush.bf16.msrb.mxu3 (%p1780_p5), %v3429_v23  ;;  %v1904_v12 = vld [vmem:[#allocation11] sm:$0xff] (%p1780_p5)  ;;  %v1911_v31 = vld [vmem:[#allocation11 + $0x38] sm:$0xff] (%p1780_p5)  ;;  %v3442_v39 = vld [vmem:[%s4621_s21 + $0x10] sm:$0xff] (%p1780_p5) }
 0x288   : > { %1986 = vmatpush.bf16.msra.mxu2 %v3437_v59  ;;  %v1928_v16 = vpack.c.bf16 %v1905_v13, %v1904_v12  ;;  %v1908_v30 = vld [vmem:[#allocation11 + $0x20] sm:$0xff]  ;;  %v1931_v36 = vpack.c.bf16 %v1911_v31, %v1910_v34  ;;  %v3443_v25 = vld [vmem:[%s4621_s21 + $0x18] sm:$0xff]  ;;  %v3441_v51 = vld [vmem:[%s4621_s21 + $0x8] sm:$0xff] }
 0x289   : > { %v3444_v37 = vld [vmem:[%s4621_s21 + $0x20] sm:$0xff] }
 0x28a   : > { %v5042_v40 = vld [vmem:[%s977_s9] ss:$0 sm:$0xff]  ;;  %s4191_s9 = smov 0  }
 0x28b   : > { %1878 = vmatpush.bf16.msrb.mxu3 %v3428_v1  ;;  %v5049_v42 = vld [vmem:[%s986_s7] ss:$0 sm:$0xff] }
 0x28c   : > { %1987 = vmatpush.bf16.msra.mxu2 %v3436_v2  ;;  %v3440_v9 = vld [vmem:[%s4621_s21] sm:$0xff] }
 0x28e   : > { %v1795_v46 = vld [vmem:[#allocation4] sm:$0xff]  ;;  %v1796_v62 = vld [vmem:[#allocation4 + $0x8] sm:$0xff]  ;;  %v1797_v60 = vld [vmem:[#allocation4 + $0x10] sm:$0xff] }
 0x28f   : > { %2254 = vst [vmem:[#allocation4] sm:$0xff] %v4204_v33  ;;  %v1798_v63 = vld [vmem:[#allocation4 + $0x18] sm:$0xff]  ;;  %v1799_v26 = vld [vmem:[#allocation4 + $0x20] sm:$0xff]  ;;  %1879 = vmatpush.bf16.msrb.mxu3 %v3427_v57  ;;  %v1800_v10 = vld [vmem:[#allocation4 + $0x28] sm:$0xff]  ;;  %v1819_v19 = vpack.c.bf16 %v1796_v62, %v1795_v46 }
 0x290   : > { %2255 = vst [vmem:[#allocation4 + $0x8] sm:$0xff] %v4204_v33  ;;  %1988 = vmatpush.bf16.msra.mxu2 %v3435_v41  ;;  %v1801_v17 = vld [vmem:[#allocation4 + $0x30] sm:$0xff]  ;;  %v1802_v6 = vld [vmem:[#allocation4 + $0x38] sm:$0xff]  ;;  %v1820_v21 = vpack.c.bf16 %v1798_v63, %v1797_v60  ;;  %v1821_v47 = vpack.c.bf16 %v1800_v10, %v1799_v26 }
 0x291   : > { %2256 = vst [vmem:[#allocation4 + $0x10] sm:$0xff] %v4204_v33  ;;  %v1822_v35 = vpack.c.bf16 %v1802_v6, %v1801_v17 }
 0x292   : > { %2257 = vst [vmem:[#allocation4 + $0x18] sm:$0xff] %v4204_v33 }
 0x293   : > { %2258 = vst [vmem:[#allocation4 + $0x20] sm:$0xff] %v4204_v33  ;;  %1880 = vmatpush.bf16.msrb.mxu3 %v3426_v3 }
 0x294   : > { %2259 = vst [vmem:[#allocation4 + $0x28] sm:$0xff] %v4204_v33  ;;  %1989 = vmatpush.bf16.msra.mxu2 %v3434_v4 }
 0x295   : > { %2260 = vst [vmem:[#allocation4 + $0x30] sm:$0xff] %v4204_v33 }
 0x296   : > { %2261 = vst [vmem:[#allocation4 + $0x38] sm:$0xff] %v4204_v33  ;;  %v1930_v33 = vpack.c.bf16 %v1909_v5, %v1908_v30 }
 0x297   : > { %1881 = vmatpush.bf16.msrb.mxu3 %v3425_v52 }
 0x298   : > { %1990 = vmatpush.bf16.msra.mxu2 %v3433_v7 }
 0x29b   : > { %1882 = vmatpush.bf16.msrb.mxu3 %v3424_v0 }
 0x29c   : > { %1991 = vmatpush.bf16.msra.mxu2 %v3432_v32 }
 0x29e   : > { %1883 = vmatmul.bf16.vlgmr.msrb.gmra.mxu3 %v1819_v19 }
 0x29f   : > { %1992 = vmatmul.bf16.vlgmr.msra.gmra.mxu2 %v1928_v16  ;;  %2217 = vmatpush.bf16.msra.mxu3 %v3447_v28 }
 0x2a3   : > { %2218 = vmatpush.bf16.msra.mxu3 %v3446_v29 }
 0x2a7   : > { %2219 = vmatpush.bf16.msra.mxu3 %v3445_v61 }
 0x2ab   : > { %2220 = vmatpush.bf16.msra.mxu3 %v3444_v37 }
 0x2ae   : > { %1888 = vmatmul.bf16.gmra.mxu3 %v1820_v21 }
 0x2af   : > { %1997 = vmatmul.bf16.gmra.mxu2 %v1929_v22  ;;  %2221 = vmatpush.bf16.msra.mxu3 %v3443_v25 }
 0x2b3   : > { %2222 = vmatpush.bf16.msra.mxu3 %v3442_v39 }
 0x2b7   : > { %2223 = vmatpush.bf16.msra.mxu3 %v3441_v51 }
 0x2bb   : > { %2224 = vmatpush.bf16.msra.mxu3 %v3440_v9 }
 0x2be   : > { %1893 = vmatmul.bf16.gmra.mxu3 %v1821_v47 }
 0x2bf   : > { %2002 = vmatmul.bf16.gmra.mxu2 %v1930_v33 }
 0x2ce   : > { %1898 = vmatmul.bf16.gmra.mxu3 %v1822_v35 }
 0x2cf   : > { %2007 = vmatmul.bf16.gmra.mxu2 %v1931_v36 }
 0x321   : > { %v1884_v43 = vpop.f32.mrf.mxu3 }
 0x322   : > { %v1993_v44 = vpop.f32.mrf.mxu2  ;;  %v1885_v45 = vadd.f32 %v5042_v40, %v1884_v43 }
 0x323   : > { %v1994_v38 = vadd.f32 %v5049_v42, %v1993_v44 }
 0x325   : > { %v5053_v50 = vadd.f32 %v1994_v38, %v1885_v45 }
 0x327   : > { %v2029_v48 = vand.u32 2147483647, %v5053_v50  ;;  %v2021_v44 = vmax.f32 %v5053_v50, 0.0 }
 0x329   : > { %v2037_v54 = vsub.f32 0.0, %v2029_v48  ;;  %v1886_v55 = vpop.f32.mrf.mxu3 }
 0x32a   : > { %v1995_v49 = vpop.f32.mrf.mxu2  ;;  %v1887_v46 = vadd.f32 %v5042_v40, %v1886_v55 }
 0x32b   : > { %v2045_v56 = vmul.f32 1.442695, %v2037_v54  ;;  %v1996_v23 = vadd.f32 %v5049_v42, %v1995_v49 }
 0x32d   : > { %3679 = vpow2.f32 %v2045_v56  ;;  %v2014_v59 = vadd.f32 %v1996_v23, %v1887_v46 }
 0x32f   : > { %v2030_v62 = vand.u32 2147483647, %v2014_v59  ;;  %v2022_v54 = vmax.f32 %v2014_v59, 0.0 }
 0x331   : > { %v2038_v60 = vsub.f32 0.0, %v2030_v62  ;;  %v1889_v63 = vpop.f32.mrf.mxu3 }
 0x332   : > { %v1998_v1 = vpop.f32.mrf.mxu2  ;;  %v1890_v41 = vadd.f32 %v5042_v40, %v1889_v63 }
 0x333   : > { %v3680_v2 = vpop.eup %3679  ;;  %v2047_v57 = vmul.f32 1.442695, %v2038_v60  ;;  %v1999_v26 = vadd.f32 %v5049_v42, %v1998_v1 }
 0x334   : > { %v2061_v3 = vadd.f32 1.0, %v3680_v2  ;;  %v2064_v7 = vmul.f32 -0.5, %v3680_v2  ;;  %v2067_v22 = vand.u32 2147483647, %v3680_v2 }
 0x335   : > { %3681 = vpow2.f32 %v2047_v57  ;;  %v5062_v4 = vadd.f32 %v1999_v26, %v1890_v41 }
 0x336   : > { %3683 = vlog2.f32 %v2061_v3  ;;  %v2065_v8 = vadd.f32 1.0, %v2064_v7  ;;  %vm5070_vm0 = vcmp.lt.f32.partialorder %v2067_v22, 0.0004427343 }
 0x337   : > { %v2031_v10 = vand.u32 2147483647, %v5062_v4 }
 0x338   : > { %v2066_v30 = vmul.f32 %v3680_v2, %v2065_v8 }
 0x339   : > { %v2039_v52 = vsub.f32 0.0, %v2031_v10  ;;  %v1891_v0 = vpop.f32.mrf.mxu3 }
 0x33a   : > { %v2000_v32 = vpop.f32.mrf.mxu2  ;;  %v1892_v19 = vadd.f32 %v5042_v40, %v1891_v0 }
 0x33b   : > { %v3682_v12 = vpop.eup %3681  ;;  %v2049_v13 = vmul.f32 1.442695, %v2039_v52  ;;  %v2001_v16 = vadd.f32 %v5049_v42, %v2000_v32 }
 0x33c   : > { %v3684_v17 = vpop.eup %3683  ;;  %v2070_v6 = vadd.f32 1.0, %v3682_v12  ;;  %v2073_v21 = vmul.f32 -0.5, %v3682_v12  ;;  %v2076_v31 = vand.u32 2147483647, %v3682_v12 }
 0x33d   : > { %3685 = vpow2.f32 %v2049_v13  ;;  %v5067_v53 = vadd.f32 %v2001_v16, %v1892_v19  ;;  %v2063_v29 = vmul.f32 0.6931472, %v3684_v17 }
 0x33e   : > { %3687 = vlog2.f32 %v2070_v6  ;;  %v2074_v5 = vadd.f32 1.0, %v2073_v21  ;;  %vm2077_vm1 = vcmp.lt.f32.partialorder %v2076_v31, 0.0004427343 }
 0x33f   : > { %v2032_v28 = vand.u32 2147483647, %v5067_v53  ;;  %v2069_v39 = vsel %vm5070_vm0, %v2066_v30, %v2063_v29 }
 0x340   : > { %v2075_v48 = vmul.f32 %v3682_v12, %v2074_v5  ;;  %v2133_v9 = vadd.f32 %v2069_v39, %v2021_v44 }
 0x341   : > { %v2040_v61 = vsub.f32 0.0, %v2032_v28  ;;  %v1894_v47 = vpop.f32.mrf.mxu3 }
 0x342   : > { %v2003_v33 = vpop.f32.mrf.mxu2  ;;  %v1895_v37 = vadd.f32 %v5042_v40, %v1894_v47  ;;  %v3268_v63 = vadd.f32 -0.6931472, %v2133_v9  ;;  %v2023_v47 = vmax.f32 %v5062_v4, 0.0 }
 0x343   : > { %v3686_v35 = vpop.eup %3685  ;;  %v2051_v36 = vmul.f32 1.442695, %v2040_v61  ;;  %v2004_v25 = vadd.f32 %v5049_v42, %v2003_v33 }
 0x344   : > { %v3688_v43 = vpop.eup %3687  ;;  %v2079_v45 = vadd.f32 1.0, %v3686_v35  ;;  %v2082_v23 = vmul.f32 -0.5, %v3686_v35  ;;  %v2085_v0 = vand.u32 2147483647, %v3686_v35 }
 0x345   : > { %3689 = vpow2.f32 %v2051_v36  ;;  %v5079_v38 = vadd.f32 %v2004_v25, %v1895_v37  ;;  %v2072_v51 = vmul.f32 0.6931472, %v3688_v43  ;;  %v2024_v36 = vmax.f32 %v5067_v53, 0.0 }
 0x346   : > { %3691 = vlog2.f32 %v2079_v45  ;;  %v2083_v52 = vadd.f32 1.0, %v2082_v23  ;;  %vm5087_vm2 = vcmp.lt.f32.partialorder %v2085_v0, 0.0004427343 }
 0x347   : > { %v2033_v55 = vand.u32 2147483647, %v5079_v38  ;;  %v2078_v49 = vsel %vm2077_vm1, %v2075_v48, %v2072_v51 }
 0x348   : > { %v2134_v56 = vadd.f32 %v2078_v49, %v2022_v54  ;;  %v2084_v19 = vmul.f32 %v3686_v35, %v2083_v52 }
 0x349   : > { %v2041_v46 = vsub.f32 0.0, %v2033_v55  ;;  %v1896_v62 = vpop.f32.mrf.mxu3 }
 0x34a   : > { %v2005_v60 = vpop.f32.mrf.mxu2  ;;  %v3269_v50 = vadd.f32 -0.6931472, %v2134_v56  ;;  %v1897_v57 = vadd.f32 %v5042_v40, %v1896_v62 }
 0x34b   : > { %v3690_v1 = vpop.eup %3689  ;;  %v2053_v2 = vmul.f32 1.442695, %v2041_v46  ;;  %v2006_v41 = vadd.f32 %v5049_v42, %v2005_v60 }
 0x34c   : > { %v3692_v59 = vpop.eup %3691  ;;  %v2165_v26 = vpack.c.bf16 %v3269_v50, %v3268_v63  ;;  %v2088_v3 = vadd.f32 1.0, %v3690_v1  ;;  %v2091_v7 = vmul.f32 -0.5, %v3690_v1  ;;  %v2094_v21 = vand.u32 2147483647, %v3690_v1 }
 0x34d   : > { %3693 = vpow2.f32 %v2053_v2  ;;  %v5084_v10 = vadd.f32 %v2006_v41, %v1897_v57  ;;  %v2081_v12 = vmul.f32 0.6931472, %v3692_v59 }
 0x34e   : > { %2225 = vmatmul.bf16.vlgmr.msra.gmra.mxu3 %v2165_v26  ;;  %3695 = vlog2.f32 %v2088_v3  ;;  %v2092_v16 = vadd.f32 1.0, %v2091_v7  ;;  %vm2095_vm3 = vcmp.lt.f32.partialorder %v2094_v21, 0.0004427343  ;;  %v2025_v7 = vmax.f32 %v5079_v38, 0.0 }
 0x34f   : > { %v2034_v32 = vand.u32 2147483647, %v5084_v10  ;;  %v2087_v30 = vsel %vm5087_vm2, %v2084_v19, %v2081_v12 }
 0x350   : > { %v2093_v35 = vmul.f32 %v3690_v1, %v2092_v16  ;;  %v2135_v37 = vadd.f32 %v2087_v30, %v2023_v47 }
 0x351   : > { %v2042_v13 = vsub.f32 0.0, %v2034_v32  ;;  %v1899_v17 = vpop.f32.mrf.mxu3 }
 0x352   : > { %v2008_v6 = vpop.f32.mrf.mxu2  ;;  %v1900_v29 = vadd.f32 %v5042_v40, %v1899_v17  ;;  %v3270_v4 = vadd.f32 -0.6931472, %v2135_v37 }
 0x353   : > { %v3694_v22 = vpop.eup %3693  ;;  %v2055_v28 = vmul.f32 1.442695, %v2042_v13  ;;  %v2009_v61 = vadd.f32 %v5049_v42, %v2008_v6  ;;  %v2026_v13 = vmax.f32 %v5084_v10, 0.0 }
 0x354   : > { %v3696_v5 = vpop.eup %3695  ;;  %v2097_v33 = vadd.f32 1.0, %v3694_v22  ;;  %v2100_v45 = vmul.f32 -0.5, %v3694_v22  ;;  %v2103_v50 = vand.u32 2147483647, %v3694_v22 }
 0x355   : > { %3697 = vpow2.f32 %v2055_v28  ;;  %v5096_v34 = vadd.f32 %v2009_v61, %v1900_v29  ;;  %v2090_v31 = vmul.f32 0.6931472, %v3696_v5 }
 0x356   : > { %3699 = vlog2.f32 %v2097_v33  ;;  %v2101_v60 = vadd.f32 1.0, %v2100_v45  ;;  %vm2104_vm4 = vcmp.lt.f32.partialorder %v2103_v50, 0.0004427343 }
 0x357   : > { %v2035_v25 = vand.u32 2147483647, %v5096_v34  ;;  %v2096_v39 = vsel %vm2095_vm3, %v2093_v35, %v2090_v31  ;;  %v2027_v37 = vmax.f32 %v5096_v34, 0.0 }
 0x358   : > { %v2136_v43 = vadd.f32 %v2096_v39, %v2024_v36  ;;  %v2102_v41 = vmul.f32 %v3694_v22, %v2101_v60 }
 0x359   : > { %v2043_v44 = vsub.f32 0.0, %v2035_v25  ;;  %v1901_v51 = vpop.f32.mrf.mxu3 }
 0x35a   : > { %v2010_v48 = vpop.f32.mrf.mxu2  ;;  %v3271_v54 = vadd.f32 -0.6931472, %v2136_v43  ;;  %v1902_v49 = vadd.f32 %v5042_v40, %v1901_v51 }
 0x35b   : > { %v3698_v9 = vpop.eup %3697  ;;  %v2057_v55 = vmul.f32 1.442695, %v2043_v44  ;;  %v2011_v56 = vadd.f32 %v5049_v42, %v2010_v48 }
 0x35c   : > { %v3700_v53 = vpop.eup %3699  ;;  %v2166_v46 = vpack.c.bf16 %v3271_v54, %v3270_v4  ;;  %v2106_v23 = vadd.f32 1.0, %v3698_v9  ;;  %v2109_v63 = vmul.f32 -0.5, %v3698_v9  ;;  %v2112_v26 = vand.u32 2147483647, %v3698_v9 }
 0x35d   : > { %3701 = vpow2.f32 %v2057_v55  ;;  %v2020_v62 = vadd.f32 %v2011_v56, %v1902_v49  ;;  %v2099_v2 = vmul.f32 0.6931472, %v3700_v53 }
 0x35e   : > { %2230 = vmatmul.bf16.gmra.mxu3 %v2166_v46  ;;  %3703 = vlog2.f32 %v2106_v23  ;;  %v2110_v59 = vadd.f32 1.0, %v2109_v63  ;;  %vm2113_vm5 = vcmp.lt.f32.partialorder %v2112_v26, 0.0004427343 }
 0x35f   : > { %v2036_v1 = vand.u32 2147483647, %v2020_v62  ;;  %v2105_v42 = vsel %vm2104_vm4, %v2102_v41, %v2099_v2  ;;  %v2028_v43 = vmax.f32 %v2020_v62, 0.0 }
 0x360   : > { %v2111_v12 = vmul.f32 %v3698_v9, %v2110_v59  ;;  %v2137_v19 = vadd.f32 %v2105_v42, %v2025_v7 }
 0x361   : > { %v2044_v57 = vsub.f32 0.0, %v2036_v1 }
 0x362   : > { %v3272_v8 = vadd.f32 -0.6931472, %v2137_v19 }
 0x363   : > { %v3702_v40 = vpop.eup %3701  ;;  %v2059_v3 = vmul.f32 1.442695, %v2044_v57 }
 0x364   : > { %v3704_v52 = vpop.eup %3703  ;;  %v2115_v0 = vadd.f32 1.0, %v3702_v40  ;;  %v2118_v6 = vmul.f32 -0.5, %v3702_v40  ;;  %v2121_v5 = vand.u32 2147483647, %v3702_v40 }
 0x365   : > { %3705 = vpow2.f32 %v2059_v3  ;;  %v2108_v32 = vmul.f32 0.6931472, %v3704_v52 }
 0x366   : > { %3707 = vlog2.f32 %v2115_v0  ;;  %v2119_v30 = vadd.f32 1.0, %v2118_v6  ;;  %vm2122_vm6 = vcmp.lt.f32.partialorder %v2121_v5, 0.0004427343 }
 0x367   : > { %v2114_v16 = vsel %vm2113_vm5, %v2111_v12, %v2108_v32 }
 0x368   : > { %v2138_v17 = vadd.f32 %v2114_v16, %v2026_v13  ;;  %v2120_v33 = vmul.f32 %v3702_v40, %v2119_v30 }
 0x36a   : > { %v3273_v21 = vadd.f32 -0.6931472, %v2138_v17 }
 0x36b   : > { %v3706_v22 = vpop.eup %3705 }
 0x36c   : > { %v3708_v28 = vpop.eup %3707  ;;  %v2167_v29 = vpack.c.bf16 %v3273_v21, %v3272_v8  ;;  %v2124_v61 = vadd.f32 1.0, %v3706_v22  ;;  %v2127_v38 = vmul.f32 -0.5, %v3706_v22  ;;  %v2130_v31 = vand.u32 2147483647, %v3706_v22 }
 0x36d   : > { %v2117_v47 = vmul.f32 0.6931472, %v3708_v28 }
 0x36e   : > { %2235 = vmatmul.bf16.gmra.mxu3 %v2167_v29  ;;  %3709 = vlog2.f32 %v2124_v61  ;;  %v2128_v10 = vadd.f32 1.0, %v2127_v38  ;;  %vm2131_vm7 = vcmp.lt.f32.partialorder %v2130_v31, 0.0004427343 }
 0x36f   : > { %v2123_v35 = vsel %vm2122_vm6, %v2120_v33, %v2117_v47 }
 0x370   : > { %v2129_v39 = vmul.f32 %v3706_v22, %v2128_v10  ;;  %v2139_v44 = vadd.f32 %v2123_v35, %v2027_v37 }
 0x372   : > { %v3274_v48 = vadd.f32 -0.6931472, %v2139_v44 }
 0x374   : > { %v3710_v36 = vpop.eup %3709 }
 0x375   : > { %v2126_v25 = vmul.f32 0.6931472, %v3710_v36 }
 0x377   : > { %v2132_v45 = vsel %vm2131_vm7, %v2129_v39, %v2126_v25 }
 0x378   : > { %v2140_v51 = vadd.f32 %v2132_v45, %v2028_v43 }
 0x37a   : > { %v3275_v4 = vadd.f32 -0.6931472, %v2140_v51 }
 0x37c   : > { %v2168_v54 = vpack.c.bf16 %v3275_v4, %v3274_v48 }
 0x37e   : > { %2240 = vmatmul.bf16.gmra.mxu3 %v2168_v54 }
 0x3d1   : > { %v2226_v9 = vpop.f32.mrf.mxu3 }
 0x3d2   : > { %2246 = vst [vmem:[#allocation3] sm:$0xff] %v2226_v9 }
 0x3d9   : > { %v2228_v55 = vpop.f32.mrf.mxu3 }
 0x3da   : > { %2247 = vst [vmem:[#allocation3 + $0x8] sm:$0xff] %v2228_v55 }
 0x3e1   : > { %v2231_v49 = vpop.f32.mrf.mxu3 }
 0x3e2   : > { %2248 = vst [vmem:[#allocation3 + $0x10] sm:$0xff] %v2231_v49 }
 0x3e9   : > { %v2233_v56 = vpop.f32.mrf.mxu3 }
 0x3ea   : > { %2249 = vst [vmem:[#allocation3 + $0x18] sm:$0xff] %v2233_v56 }
 0x3f1   : > { %v2236_v34 = vpop.f32.mrf.mxu3 }
 0x3f2   : > { %2250 = vst [vmem:[#allocation3 + $0x20] sm:$0xff] %v2236_v34 }
 0x3f9   : > { %v2238_v53 = vpop.f32.mrf.mxu3 }
 0x3fa   : > { %2251 = vst [vmem:[#allocation3 + $0x28] sm:$0xff] %v2238_v53 }
 0x401   : > { %v2241_v46 = vpop.f32.mrf.mxu3 }
 0x402   : > { %2252 = vst [vmem:[#allocation3 + $0x30] sm:$0xff] %v2241_v46 }
 0x409   : > { %v2243_v23 = vpop.f32.mrf.mxu3 }
 0x40a   : > { %2253 = vst [vmem:[#allocation3 + $0x38] sm:$0xff] %v2243_v23 }
 0x40b LB: >> { %s2268_s7 = sld [smem:[#allocation6 + %s4193_s9]]  ;;  %s2272_s23 = scalar_lea.vmem [#allocation2], %s4193_s9  ;;  %s4193_s9 = sphi %s4191_s9, %s2267_s9  }
 0x40c   : >> { %s2269_s21 = sld [smem:[#allocation7 + %s4193_s9]]  ;;  %v2273_v62 = vld [vmem:[%s2272_s23] sm:$0x1]  ;;  %s2267_s9 = sadd.s32 1, %s4193_s9  }
 0x40d   : >> { %p2264_p8 = scmp.ge.s32.totalorder %s2267_s9, 128  }
 0x40e   : > { %v3455_v2 = vld [vmem:[%s4623_s6 + $0x38] sm:$0xff] (%p2264_p8)  ;;  %v3454_v57 = vld [vmem:[%s4623_s6 + $0x30] sm:$0xff] (%p2264_p8)  ;;  %v3453_v41 = vld [vmem:[%s4623_s6 + $0x28] sm:$0xff] (%p2264_p8)  ;;  %s4205_s4 = smov (%p2264_p8), [#allocation21]   ;;  %s5320_s12 = sld [smem:[#allocation44_spill]] (%p2264_p8) }
 0x40f   : > { %2359 = vmatpush.bf16.msrb.mxu0 (%p2264_p8), %v3455_v2  ;;  %v3452_v59 = vld [vmem:[%s4623_s6 + $0x20] sm:$0xff] (%p2264_p8)  ;;  %v3451_v26 = vld [vmem:[%s4623_s6 + $0x18] sm:$0xff] (%p2264_p8)  ;;  %v3450_v40 = vld [vmem:[%s4623_s6 + $0x10] sm:$0xff] (%p2264_p8)  ;;  %p3545_p9 = scmp.eq.s32.totalorder (%p2264_p8), %s4338_s1, 1  ;;  %s4206_s15 = smov (%p2264_p8), 128  }
 0x410   : > { %v3449_v3 = vld [vmem:[%s4623_s6 + $0x8] sm:$0xff] (%p2264_p8)  ;;  %v3448_v42 = vld [vmem:[%s4623_s6] sm:$0xff] (%p2264_p8)  ;;  %v3463_v22 = vld [vmem:[%s4625_s2 + $0x38] sm:$0xff] (%p2264_p8)  ;;  %s4207_s0 = smov (%p2264_p8), 8  }
 0x411   : >> { %s2270_s29 = scalar_lea.vmem [#allocation3], %s2268_s7  ;;  %2588 = vmatpush.bf16.msrb.mxu1 (%p2264_p8), %v3463_v22  ;;  %v3462_v28 = vld [vmem:[%s4625_s2 + $0x30] sm:$0xff] (%p2264_p8)  ;;  %v3461_v29 = vld [vmem:[%s4625_s2 + $0x28] sm:$0xff] (%p2264_p8)  ;;  %v3460_v61 = vld [vmem:[%s4625_s2 + $0x20] sm:$0xff] (%p2264_p8) }
 0x412   : >> { %v2271_v60 = vld [vmem:[%s2270_s29] sm:$0x1]  ;;  %s2275_s22 = scalar_lea.vmem [#allocation4], %s2269_s21  ;;  %v3459_v30 = vld [vmem:[%s4625_s2 + $0x18] sm:$0xff] (%p2264_p8)  ;;  %v3458_v5 = vld [vmem:[%s4625_s2 + $0x10] sm:$0xff] (%p2264_p8) }
 0x413   : >> { %v2274_v63 = vmul.f32 %v2273_v62, %v2271_v60  ;;  %v2276_v50 = vld [vmem:[%s2275_s22] sm:$0x1]  ;;  %2266 = sbr.rel (!%p2264_p8) target bundleno = 1035 (0x40b), region = 266  ;;  %2360 = vmatpush.bf16.msrb.mxu0 (%p2264_p8), %v3454_v57  ;;  %v3457_v10 = vld [vmem:[%s4625_s2 + $0x8] sm:$0xff] (%p2264_p8) }
 0x414   : > { %v5123_v38 = vld [vmem:[%s980_s5] ss:$0 sm:$0xff] (%p2264_p8)  ;;  %s2768_s3 = sshll.u32 (%p2264_p8), %s5320_s12, 4  ;;  %s2769_s3 = int_to_ptr.hbm [resolvable:$true] %s2768_s3 }
 0x415   : >> { %v2277_v1 = vadd.f32 %v2276_v50, %v2274_v63  ;;  %2589 = vmatpush.bf16.msrb.mxu1 (%p2264_p8), %v3462_v28  ;;  %v3456_v36 = vld [vmem:[%s4625_s2] sm:$0xff] (%p2264_p8) }
 0x417   : >> { %2278 = vst [vmem:[%s2275_s22] sm:$0x1] %v2277_v1  ;;  %2361 = vmatpush.bf16.msrb.mxu0 (%p2264_p8), %v3453_v41 }
 0x419   : > { %2590 = vmatpush.bf16.msrb.mxu1 %v3461_v29 }
 0x41b   : > { %2362 = vmatpush.bf16.msrb.mxu0 %v3452_v59 }
 0x41d   : > { %2591 = vmatpush.bf16.msrb.mxu1 %v3460_v61 }
 0x41e   : > { %v2279_v52 = vld [vmem:[#allocation4] sm:$0xff]  ;;  %v2280_v7 = vld [vmem:[#allocation4 + $0x8] sm:$0xff]  ;;  %v2281_v32 = vld [vmem:[#allocation4 + $0x10] sm:$0xff] }
 0x41f   : > { %2363 = vmatpush.bf16.msrb.mxu0 %v3451_v26  ;;  %v2303_v0 = vpack.c.bf16 %v2280_v7, %v2279_v52  ;;  %v2282_v12 = vld [vmem:[#allocation4 + $0x18] sm:$0xff]  ;;  %v2283_v19 = vld [vmem:[#allocation4 + $0x20] sm:$0xff]  ;;  %v2284_v16 = vld [vmem:[#allocation4 + $0x28] sm:$0xff] }
 0x420   : > { %v2304_v13 = vpack.c.bf16 %v2282_v12, %v2281_v32  ;;  %v2305_v17 = vpack.c.bf16 %v2284_v16, %v2283_v19  ;;  %v2285_v6 = vld [vmem:[#allocation4 + $0x30] sm:$0xff]  ;;  %v2286_v8 = vld [vmem:[#allocation4 + $0x38] sm:$0xff] }
 0x421   : > { %v2306_v21 = vpack.c.bf16 %v2286_v8, %v2285_v6  ;;  %2592 = vmatpush.bf16.msrb.mxu1 %v3459_v30 }
 0x423   : > { %2364 = vmatpush.bf16.msrb.mxu0 %v3450_v40 }
 0x425   : > { %2593 = vmatpush.bf16.msrb.mxu1 %v3458_v5 }
 0x427   : > { %2365 = vmatpush.bf16.msrb.mxu0 %v3449_v3 }
 0x429   : > { %2594 = vmatpush.bf16.msrb.mxu1 %v3457_v10 }
 0x42b   : > { %2366 = vmatpush.bf16.msrb.mxu0 %v3448_v42 }
 0x42d   : > { %2595 = vmatpush.bf16.msrb.mxu1 %v3456_v36 }
 0x42e   : > { %2367 = vmatmul.bf16.vlgmr.msrb.gmra.mxu0 %v2303_v0 }
 0x43e   : > { %2372 = vmatmul.bf16.gmra.mxu0 %v2304_v13 }
 0x44e   : > { %2377 = vmatmul.bf16.gmra.mxu0 %v2305_v17 }
 0x45e   : > { %2382 = vmatmul.bf16.gmra.mxu0 %v2306_v21 }
 0x4ab   : > { %v2368_v47 = vpop.f32.mrf.mxu0 }
 0x4ac   : > { %v2369_v33 = vadd.f32 %v5123_v38, %v2368_v47 }
 0x4ae   : > { %v2396_v31 = vand.u32 2147483647, %v2369_v33  ;;  %v2388_v7 = vmax.f32 %v2369_v33, 0.0 }
 0x4b0   : > { %v2404_v35 = vsub.f32 0.0, %v2396_v31 }
 0x4b2   : > { %v2412_v37 = vmul.f32 1.442695, %v2404_v35 }
 0x4b3   : > { %v2370_v25 = vpop.f32.mrf.mxu0 }
 0x4b4   : > { %3713 = vpow2.f32 %v2412_v37  ;;  %v2371_v39 = vadd.f32 %v5123_v38, %v2370_v25 }
 0x4b6   : > { %v2397_v43 = vand.u32 2147483647, %v2371_v39  ;;  %v2389_v16 = vmax.f32 %v2371_v39, 0.0 }
 0x4b8   : > { %v2405_v44 = vsub.f32 0.0, %v2397_v43 }
 0x4ba   : > { %v3714_v45 = vpop.eup %3713  ;;  %v2414_v51 = vmul.f32 1.442695, %v2405_v44 }
 0x4bb   : > { %v2373_v48 = vpop.f32.mrf.mxu0  ;;  %v2428_v4 = vadd.f32 1.0, %v3714_v45  ;;  %v2431_v49 = vmul.f32 -0.5, %v3714_v45  ;;  %v2434_v50 = vand.u32 2147483647, %v3714_v45 }
 0x4bc   : > { %3715 = vpow2.f32 %v2414_v51  ;;  %v5131_v54 = vadd.f32 %v5123_v38, %v2373_v48 }
 0x4bd   : > { %3717 = vlog2.f32 %v2428_v4  ;;  %v2432_v60 = vadd.f32 1.0, %v2431_v49  ;;  %vm2435_vm8 = vcmp.lt.f32.partialorder %v2434_v50, 0.0004427343 }
 0x4be   : > { %v2398_v9 = vand.u32 2147483647, %v5131_v54 }
 0x4bf   : > { %v2433_v41 = vmul.f32 %v3714_v45, %v2432_v60 }
 0x4c0   : > { %v2406_v55 = vsub.f32 0.0, %v2398_v9 }
 0x4c2   : > { %v3716_v56 = vpop.eup %3715  ;;  %v2416_v34 = vmul.f32 1.442695, %v2406_v55 }
 0x4c3   : > { %v3718_v53 = vpop.eup %3717  ;;  %v2375_v46 = vpop.f32.mrf.mxu0  ;;  %v2437_v23 = vadd.f32 1.0, %v3716_v56  ;;  %v2440_v63 = vmul.f32 -0.5, %v3716_v56  ;;  %v2443_v26 = vand.u32 2147483647, %v3716_v56 }
 0x4c4   : > { %3719 = vpow2.f32 %v2416_v34  ;;  %v5135_v62 = vadd.f32 %v5123_v38, %v2375_v46  ;;  %v2430_v2 = vmul.f32 0.6931472, %v3718_v53 }
 0x4c5   : > { %3721 = vlog2.f32 %v2437_v23  ;;  %v2441_v59 = vadd.f32 1.0, %v2440_v63  ;;  %vm2444_vm9 = vcmp.lt.f32.partialorder %v2443_v26, 0.0004427343 }
 0x4c6   : > { %v2399_v1 = vand.u32 2147483647, %v5135_v62  ;;  %v2436_v42 = vsel %vm2435_vm8, %v2433_v41, %v2430_v2  ;;  %v2391_v63 = vmax.f32 %v5135_v62, 0.0 }
 0x4c7   : > { %v2442_v19 = vmul.f32 %v3716_v56, %v2441_v59  ;;  %v2500_v17 = vadd.f32 %v2436_v42, %v2388_v7  ;;  %v2390_v56 = vmax.f32 %v5131_v54, 0.0 }
 0x4c8   : > { %v2407_v57 = vsub.f32 0.0, %v2399_v1 }
 0x4c9   : > { %v3340_v29 = vadd.f32 -0.6931472, %v2500_v17 }
 0x4ca   : > { %v3720_v40 = vpop.eup %3719  ;;  %v2418_v3 = vmul.f32 1.442695, %v2407_v57 }
 0x4cb   : > { %v3722_v52 = vpop.eup %3721  ;;  %v2378_v0 = vpop.f32.mrf.mxu0  ;;  %v2446_v32 = vadd.f32 1.0, %v3720_v40  ;;  %v2449_v28 = vmul.f32 -0.5, %v3720_v40  ;;  %v2452_v25 = vand.u32 2147483647, %v3720_v40 }
 0x4cc   : > { %3723 = vpow2.f32 %v2418_v3  ;;  %v5139_v12 = vadd.f32 %v5123_v38, %v2378_v0  ;;  %v2439_v13 = vmul.f32 0.6931472, %v3722_v52 }
 0x4cd   : > { %3725 = vlog2.f32 %v2446_v32  ;;  %v2450_v36 = vadd.f32 1.0, %v2449_v28  ;;  %vm2453_vm10 = vcmp.lt.f32.partialorder %v2452_v25, 0.0004427343 }
 0x4ce   : > { %v2400_v6 = vand.u32 2147483647, %v5139_v12  ;;  %v2445_v8 = vsel %vm2444_vm9, %v2442_v19, %v2439_v13 }
 0x4cf   : > { %v2501_v21 = vadd.f32 %v2445_v8, %v2389_v16  ;;  %v2451_v45 = vmul.f32 %v3720_v40, %v2450_v36 }
 0x4d0   : > { %v2408_v22 = vsub.f32 0.0, %v2400_v6 }
 0x4d1   : > { %v3341_v61 = vadd.f32 -0.6931472, %v2501_v21 }
 0x4d2   : > { %v3724_v30 = vpop.eup %3723  ;;  %v2420_v5 = vmul.f32 1.442695, %v2408_v22 }
 0x4d3   : > { %v3726_v47 = vpop.eup %3725  ;;  %v2380_v33 = vpop.f32.mrf.mxu0  ;;  %v2532_v10 = vpack.c.bf16 %v3341_v61, %v3340_v29  ;;  %v2455_v31 = vadd.f32 1.0, %v3724_v30  ;;  %v2458_v37 = vmul.f32 -0.5, %v3724_v30  ;;  %v2461_v48 = vand.u32 2147483647, %v3724_v30 }
 0x4d4   : > { %3727 = vpow2.f32 %v2420_v5  ;;  %v5143_v35 = vadd.f32 %v5123_v38, %v2380_v33  ;;  %v2448_v43 = vmul.f32 0.6931472, %v3726_v47  ;;  %v2392_v5 = vmax.f32 %v5139_v12, 0.0 }
 0x4d5   : > { %2596 = vmatmul.bf16.vlgmr.msrb.gmra.mxu1 %v2532_v10  ;;  %3729 = vlog2.f32 %v2455_v31  ;;  %v2459_v51 = vadd.f32 1.0, %v2458_v37  ;;  %vm2462_vm11 = vcmp.lt.f32.partialorder %v2461_v48, 0.0004427343 }
 0x4d6   : > { %v2401_v39 = vand.u32 2147483647, %v5143_v35  ;;  %v2454_v55 = vsel %vm2453_vm10, %v2451_v45, %v2448_v43  ;;  %v2393_v10 = vmax.f32 %v5143_v35, 0.0 }
 0x4d7   : > { %v2460_v60 = vmul.f32 %v3724_v30, %v2459_v51  ;;  %v2502_v50 = vadd.f32 %v2454_v55, %v2390_v56 }
 0x4d8   : > { %v2409_v44 = vsub.f32 0.0, %v2401_v39 }
 0x4d9   : > { %v3342_v54 = vadd.f32 -0.6931472, %v2502_v50 }
 0x4da   : > { %v3728_v4 = vpop.eup %3727  ;;  %v2422_v9 = vmul.f32 1.442695, %v2409_v44 }
 0x4db   : > { %v3730_v49 = vpop.eup %3729  ;;  %v2383_v34 = vpop.f32.mrf.mxu0  ;;  %v2464_v53 = vadd.f32 1.0, %v3728_v4  ;;  %v2467_v59 = vmul.f32 -0.5, %v3728_v4  ;;  %v2470_v19 = vand.u32 2147483647, %v3728_v4 }
 0x4dc   : > { %3731 = vpow2.f32 %v2422_v9  ;;  %v5148_v46 = vadd.f32 %v5123_v38, %v2383_v34  ;;  %v2457_v23 = vmul.f32 0.6931472, %v3730_v49 }
 0x4dd   : > { %3733 = vlog2.f32 %v2464_v53  ;;  %v2468_v32 = vadd.f32 1.0, %v2467_v59  ;;  %vm2471_vm12 = vcmp.lt.f32.partialorder %v2470_v19, 0.0004427343 }
 0x4de   : > { %v2402_v1 = vand.u32 2147483647, %v5148_v46  ;;  %v2463_v2 = vsel %vm2462_vm11, %v2460_v60, %v2457_v23  ;;  %v2394_v23 = vmax.f32 %v5148_v46, 0.0 }
 0x4df   : > { %v2503_v57 = vadd.f32 %v2463_v2, %v2391_v63  ;;  %v2469_v8 = vmul.f32 %v3728_v4, %v2468_v32 }
 0x4e0   : > { %v2410_v41 = vsub.f32 0.0, %v2402_v1 }
 0x4e1   : > { %v3343_v26 = vadd.f32 -0.6931472, %v2503_v57 }
 0x4e2   : > { %v3732_v40 = vpop.eup %3731  ;;  %v2424_v3 = vmul.f32 1.442695, %v2410_v41 }
 0x4e3   : > { %v3734_v42 = vpop.eup %3733  ;;  %v2385_v52 = vpop.f32.mrf.mxu0  ;;  %v2533_v7 = vpack.c.bf16 %v3343_v26, %v3342_v54  ;;  %v2473_v0 = vadd.f32 1.0, %v3732_v40  ;;  %v2476_v13 = vmul.f32 -0.5, %v3732_v40  ;;  %v2479_v22 = vand.u32 2147483647, %v3732_v40  ;;  %v5161_v26 = vld [vmem:[%s983_s24] ss:$0 sm:$0xff] }
 0x4e4   : > { %3735 = vpow2.f32 %v2424_v3  ;;  %v2386_v62 = vadd.f32 %v5123_v38, %v2385_v52  ;;  %v2466_v17 = vmul.f32 0.6931472, %v3734_v42  ;;  %s2766_s24 = sshll.u32 %s4205_s4, 4  ;;  %s2767_s24 = int_to_ptr.vmem [resolvable:$true] %s2766_s24 }
 0x4e5   : > { %2601 = vmatmul.bf16.gmra.mxu1 %v2533_v7  ;;  %3737 = vlog2.f32 %v2473_v0  ;;  %v2477_v21 = vadd.f32 1.0, %v2476_v13  ;;  %vm2480_vm13 = vcmp.lt.f32.partialorder %v2479_v22, 0.0004427343 }
 0x4e6   : > { %v2403_v16 = vand.u32 2147483647, %v2386_v62  ;;  %v2472_v61 = vsel %vm2471_vm12, %v2469_v8, %v2466_v17  ;;  %v2395_v50 = vmax.f32 %v2386_v62, 0.0 }
 0x4e7   : > { %v2478_v33 = vmul.f32 %v3732_v40, %v2477_v21  ;;  %v2504_v31 = vadd.f32 %v2472_v61, %v2392_v5 }
 0x4e8   : > { %v2411_v6 = vsub.f32 0.0, %v2403_v16 }
 0x4e9   : > { %v3344_v39 = vadd.f32 -0.6931472, %v2504_v31 }
 0x4ea   : > { %v3736_v28 = vpop.eup %3735  ;;  %v2426_v29 = vmul.f32 1.442695, %v2411_v6 }
 0x4eb   : > { %v3738_v30 = vpop.eup %3737  ;;  %v2482_v47 = vadd.f32 1.0, %v3736_v28  ;;  %v2485_v25 = vmul.f32 -0.5, %v3736_v28  ;;  %v2488_v9 = vand.u32 2147483647, %v3736_v28 }
 0x4ec   : > { %3739 = vpow2.f32 %v2426_v29  ;;  %v2475_v38 = vmul.f32 0.6931472, %v3738_v30 }
 0x4ed   : > { %3741 = vlog2.f32 %v2482_v47  ;;  %v2486_v4 = vadd.f32 1.0, %v2485_v25  ;;  %vm2489_vm14 = vcmp.lt.f32.partialorder %v2488_v9, 0.0004427343 }
 0x4ee   : > { %v2481_v36 = vsel %vm2480_vm13, %v2478_v33, %v2475_v38 }
 0x4ef   : > { %v2505_v37 = vadd.f32 %v2481_v36, %v2393_v10  ;;  %v2487_v49 = vmul.f32 %v3736_v28, %v2486_v4 }
 0x4f1   : > { %v3345_v43 = vadd.f32 -0.6931472, %v2505_v37 }
 0x4f2   : > { %v3740_v44 = vpop.eup %3739 }
 0x4f3   : > { %v3742_v45 = vpop.eup %3741  ;;  %v2534_v51 = vpack.c.bf16 %v3345_v43, %v3344_v39  ;;  %v2491_v48 = vadd.f32 1.0, %v3740_v44  ;;  %v2494_v12 = vmul.f32 -0.5, %v3740_v44  ;;  %v2497_v56 = vand.u32 2147483647, %v3740_v44 }
 0x4f4   : > { %v2484_v55 = vmul.f32 0.6931472, %v3742_v45 }
 0x4f5   : > { %2606 = vmatmul.bf16.gmra.mxu1 %v2534_v51  ;;  %3743 = vlog2.f32 %v2491_v48  ;;  %v2495_v35 = vadd.f32 1.0, %v2494_v12  ;;  %vm2498_vm15 = vcmp.lt.f32.partialorder %v2497_v56, 0.0004427343 }
 0x4f6   : > { %v2490_v34 = vsel %vm2489_vm14, %v2487_v49, %v2484_v55 }
 0x4f7   : > { %v2496_v63 = vmul.f32 %v3740_v44, %v2495_v35  ;;  %v2506_v1 = vadd.f32 %v2490_v34, %v2394_v23 }
 0x4f9   : > { %v3346_v41 = vadd.f32 -0.6931472, %v2506_v1 }
 0x4fb   : > { %v3744_v53 = vpop.eup %3743 }
 0x4fc   : > { %v2493_v60 = vmul.f32 0.6931472, %v3744_v53 }
 0x4fe   : > { %v2499_v2 = vsel %vm2498_vm15, %v2496_v63, %v2493_v60 }
 0x4ff   : > { %v2507_v57 = vadd.f32 %v2499_v2, %v2395_v50 }
 0x501   : > { %v3347_v59 = vadd.f32 -0.6931472, %v2507_v57 }
 0x503   : > { %v2535_v54 = vpack.c.bf16 %v3347_v59, %v3346_v41 }
 0x505   : > { %2611 = vmatmul.bf16.gmra.mxu1 %v2535_v54 }
 0x552   : > { %v2597_v40 = vpop.f32.mrf.mxu1 }
 0x553   : > { %v2598_v46 = vadd.f32 %v5161_v26, %v2597_v40 }
 0x555   : > { %v2625_v3 = vand.u32 2147483647, %v2598_v46  ;;  %v2617_v37 = vmax.f32 %v2598_v46, 0.0 }
 0x557   : > { %v2633_v42 = vsub.f32 0.0, %v2625_v3 }
 0x559   : > { %v2641_v52 = vmul.f32 1.442695, %v2633_v42 }
 0x55a   : > { %v2599_v7 = vpop.f32.mrf.mxu1 }
 0x55b   : > { %3745 = vpow2.f32 %v2641_v52  ;;  %v2600_v0 = vadd.f32 %v5161_v26, %v2599_v7 }
 0x55d   : > { %v2626_v62 = vand.u32 2147483647, %v2600_v0  ;;  %v2618_v60 = vmax.f32 %v2600_v0, 0.0 }
 0x55f   : > { %v2634_v32 = vsub.f32 0.0, %v2626_v62 }
 0x561   : > { %v3746_v13 = vpop.eup %3745  ;;  %v2643_v19 = vmul.f32 1.442695, %v2634_v32 }
 0x562   : > { %v2657_v16 = vadd.f32 1.0, %v3746_v13  ;;  %v2660_v17 = vmul.f32 -0.5, %v3746_v13  ;;  %v2602_v6 = vpop.f32.mrf.mxu1  ;;  %v2663_v29 = vand.u32 2147483647, %v3746_v13 }
 0x563   : > { %3747 = vpow2.f32 %v2643_v19  ;;  %v5166_v8 = vadd.f32 %v5161_v26, %v2602_v6 }
 0x564   : > { %3749 = vlog2.f32 %v2657_v16  ;;  %v2661_v22 = vadd.f32 1.0, %v2660_v17  ;;  %vm2664_vm0 = vcmp.lt.f32.partialorder %v2663_v29, 0.0004427343 }
 0x565   : > { %v2627_v21 = vand.u32 2147483647, %v5166_v8  ;;  %v2619_v32 = vmax.f32 %v5166_v8, 0.0 }
 0x566   : > { %v2662_v47 = vmul.f32 %v3746_v13, %v2661_v22 }
 0x567   : > { %v2635_v28 = vsub.f32 0.0, %v2627_v21 }
 0x569   : > { %v3748_v61 = vpop.eup %3747  ;;  %v2645_v30 = vmul.f32 1.442695, %v2635_v28 }
 0x56a   : > { %v3750_v5 = vpop.eup %3749  ;;  %v2666_v38 = vadd.f32 1.0, %v3748_v61  ;;  %v2604_v33 = vpop.f32.mrf.mxu1  ;;  %v2669_v31 = vmul.f32 -0.5, %v3748_v61  ;;  %v2672_v48 = vand.u32 2147483647, %v3748_v61 }
 0x56b   : > { %v2659_v10 = vmul.f32 0.6931472, %v3750_v5  ;;  %3751 = vpow2.f32 %v2645_v30  ;;  %v5170_v36 = vadd.f32 %v5161_v26, %v2604_v33 }
 0x56c   : > { %3753 = vlog2.f32 %v2666_v38  ;;  %v2670_v44 = vadd.f32 1.0, %v2669_v31  ;;  %vm2673_vm1 = vcmp.lt.f32.partialorder %v2672_v48, 0.0004427343 }
 0x56d   : > { %v2665_v25 = vsel %vm2664_vm0, %v2662_v47, %v2659_v10  ;;  %v2628_v39 = vand.u32 2147483647, %v5170_v36  ;;  %v2620_v10 = vmax.f32 %v5170_v36, 0.0 }
 0x56e   : > { %v2729_v43 = vadd.f32 %v2665_v25, %v2617_v37  ;;  %v2671_v53 = vmul.f32 %v3748_v61, %v2670_v44 }
 0x56f   : > { %v2636_v45 = vsub.f32 0.0, %v2628_v39 }
 0x570   : > { %v3380_v51 = vadd.f32 -0.6931472, %v2729_v43 }
 0x571   : > { %v3752_v4 = vpop.eup %3751  ;;  %v2647_v12 = vmul.f32 1.442695, %v2636_v45 }
 0x572   : > { %v3754_v9 = vpop.eup %3753  ;;  %v2745_v55 = vadd.f32 %v3380_v51, %v4790_v14  ;;  %v2675_v49 = vadd.f32 1.0, %v3752_v4  ;;  %v2678_v35 = vmul.f32 -0.5, %v3752_v4  ;;  %v2607_v56 = vpop.f32.mrf.mxu1  ;;  %v2681_v41 = vand.u32 2147483647, %v3752_v4 }
 0x573   : > { %v2668_v34 = vmul.f32 0.6931472, %v3754_v9  ;;  %3755 = vpow2.f32 %v2647_v12  ;;  %v5175_v23 = vadd.f32 %v5161_v26, %v2607_v56 }
 0x574   : > { %2753 = vst [vmem:[#allocation21] sm:$0xff] %v2745_v55  ;;  %3757 = vlog2.f32 %v2675_v49  ;;  %v2679_v2 = vadd.f32 1.0, %v2678_v35  ;;  %vm2682_vm2 = vcmp.lt.f32.partialorder %v2681_v41, 0.0004427343 }
 0x575   : > { %v2674_v63 = vsel %vm2673_vm1, %v2671_v53, %v2668_v34  ;;  %v2629_v50 = vand.u32 2147483647, %v5175_v23  ;;  %v2621_v56 = vmax.f32 %v5175_v23, 0.0 }
 0x576   : > { %v2730_v1 = vadd.f32 %v2674_v63, %v2618_v60  ;;  %v2680_v3 = vmul.f32 %v3752_v4, %v2679_v2 }
 0x577   : > { %v2637_v57 = vsub.f32 0.0, %v2629_v50 }
 0x578   : > { %v3381_v14 = vadd.f32 -0.6931472, %v2730_v1 }
 0x579   : > { %v3756_v59 = vpop.eup %3755  ;;  %v2649_v54 = vmul.f32 1.442695, %v2637_v57 }
 0x57a   : > { %v3758_v40 = vpop.eup %3757  ;;  %v2746_v46 = vadd.f32 %v3381_v14, %v4794_v20  ;;  %v2684_v42 = vadd.f32 1.0, %v3756_v59  ;;  %v2609_v52 = vpop.f32.mrf.mxu1  ;;  %v2687_v0 = vmul.f32 -0.5, %v3756_v59  ;;  %v2690_v21 = vand.u32 2147483647, %v3756_v59 }
 0x57b   : > { %v2677_v7 = vmul.f32 0.6931472, %v3758_v40  ;;  %3759 = vpow2.f32 %v2649_v54  ;;  %v5180_v62 = vadd.f32 %v5161_v26, %v2609_v52 }
 0x57c   : > { %2754 = vst [vmem:[#allocation21 + $0x8] sm:$0xff] %v2746_v46  ;;  %3761 = vlog2.f32 %v2684_v42  ;;  %v2688_v17 = vadd.f32 1.0, %v2687_v0  ;;  %vm2691_vm3 = vcmp.lt.f32.partialorder %v2690_v21, 0.0004427343 }
 0x57d   : > { %v2683_v13 = vsel %vm2682_vm2, %v2680_v3, %v2677_v7  ;;  %v2630_v19 = vand.u32 2147483647, %v5180_v62  ;;  %v2622_v23 = vmax.f32 %v5180_v62, 0.0 }
 0x57e   : > { %v2731_v16 = vadd.f32 %v2683_v13, %v2619_v32  ;;  %v2689_v8 = vmul.f32 %v3756_v59, %v2688_v17 }
 0x57f   : > { %v2638_v20 = vsub.f32 0.0, %v2630_v19 }
 0x580   : > { %v3382_v6 = vadd.f32 -0.6931472, %v2731_v16 }
 0x581   : > { %v3760_v22 = vpop.eup %3759  ;;  %v2651_v28 = vmul.f32 1.442695, %v2638_v20 }
 0x582   : > { %v3762_v29 = vpop.eup %3761  ;;  %v2747_v61 = vadd.f32 %v3382_v6, %v4853_v18  ;;  %v2693_v30 = vadd.f32 1.0, %v3760_v22  ;;  %v2696_v5 = vmul.f32 -0.5, %v3760_v22  ;;  %v2612_v47 = vpop.f32.mrf.mxu1  ;;  %v2699_v44 = vand.u32 2147483647, %v3760_v22 }
 0x583   : > { %v2686_v38 = vmul.f32 0.6931472, %v3762_v29  ;;  %3763 = vpow2.f32 %v2651_v28  ;;  %v5186_v33 = vadd.f32 %v5161_v26, %v2612_v47 }
 0x584   : > { %2755 = vst [vmem:[#allocation21 + $0x10] sm:$0xff] %v2747_v61  ;;  %3765 = vlog2.f32 %v2693_v30  ;;  %v2697_v39 = vadd.f32 1.0, %v2696_v5  ;;  %vm2700_vm4 = vcmp.lt.f32.partialorder %v2699_v44, 0.0004427343 }
 0x585   : > { %v2692_v31 = vsel %vm2691_vm3, %v2689_v8, %v2686_v38  ;;  %v2631_v37 = vand.u32 2147483647, %v5186_v33  ;;  %v2623_v20 = vmax.f32 %v5186_v33, 0.0 }
 0x586   : > { %v2732_v25 = vadd.f32 %v2692_v31, %v2620_v10  ;;  %v2698_v12 = vmul.f32 %v3760_v22, %v2697_v39 }
 0x587   : > { %v2639_v18 = vsub.f32 0.0, %v2631_v37 }
 0x588   : > { %v3383_v43 = vadd.f32 -0.6931472, %v2732_v25 }
 0x589   : > { %v3764_v45 = vpop.eup %3763  ;;  %v2653_v51 = vmul.f32 1.442695, %v2639_v18 }
 0x58a   : > { %v3766_v48 = vpop.eup %3765  ;;  %v2748_v4 = vadd.f32 %v3383_v43, %v4865_v27  ;;  %v2702_v9 = vadd.f32 1.0, %v3764_v45  ;;  %v2614_v55 = vpop.f32.mrf.mxu1  ;;  %v2705_v36 = vmul.f32 -0.5, %v3764_v45  ;;  %v2708_v27 = vand.u32 2147483647, %v3764_v45 }
 0x58b   : > { %v2695_v49 = vmul.f32 0.6931472, %v3766_v48  ;;  %3767 = vpow2.f32 %v2653_v51  ;;  %v2615_v35 = vadd.f32 %v5161_v26, %v2614_v55 }
 0x58c   : > { %2756 = vst [vmem:[#allocation21 + $0x18] sm:$0xff] %v2748_v4  ;;  %3769 = vlog2.f32 %v2702_v9  ;;  %v2706_v63 = vadd.f32 1.0, %v2705_v36  ;;  %vm2709_vm5 = vcmp.lt.f32.partialorder %v2708_v27, 0.0004427343 }
 0x58d   : > { %v2701_v34 = vsel %vm2700_vm4, %v2698_v12, %v2695_v49  ;;  %v2632_v53 = vand.u32 2147483647, %v2615_v35  ;;  %v2624_v5 = vmax.f32 %v2615_v35, 0.0 }
 0x58e   : > { %v2733_v60 = vadd.f32 %v2701_v34, %v2621_v56  ;;  %v2707_v26 = vmul.f32 %v3764_v45, %v2706_v63 }
 0x58f   : > { %v2640_v50 = vsub.f32 0.0, %v2632_v53 }
 0x590   : > { %v3384_v1 = vadd.f32 -0.6931472, %v2733_v60 }
 0x591   : > { %v3768_v2 = vpop.eup %3767  ;;  %v2655_v57 = vmul.f32 1.442695, %v2640_v50 }
 0x592   : > { %v3770_v14 = vpop.eup %3769  ;;  %v2749_v41 = vadd.f32 %v3384_v1, %v4904_v24  ;;  %v2711_v59 = vadd.f32 1.0, %v3768_v2  ;;  %v2714_v40 = vmul.f32 -0.5, %v3768_v2  ;;  %v2717_v7 = vand.u32 2147483647, %v3768_v2 }
 0x593   : > { %v2704_v54 = vmul.f32 0.6931472, %v3770_v14  ;;  %3771 = vpow2.f32 %v2655_v57 }
 0x594   : > { %2757 = vst [vmem:[#allocation21 + $0x20] sm:$0xff] %v2749_v41  ;;  %3773 = vlog2.f32 %v2711_v59  ;;  %v2715_v42 = vadd.f32 1.0, %v2714_v40  ;;  %vm2718_vm6 = vcmp.lt.f32.partialorder %v2717_v7, 0.0004427343 }
 0x595   : > { %v2710_v46 = vsel %vm2709_vm5, %v2707_v26, %v2704_v54 }
 0x596   : > { %v2734_v3 = vadd.f32 %v2710_v46, %v2622_v23  ;;  %v2716_v16 = vmul.f32 %v3768_v2, %v2715_v42 }
 0x598   : > { %v3385_v52 = vadd.f32 -0.6931472, %v2734_v3 }
 0x599   : > { %v3772_v0 = vpop.eup %3771 }
 0x59a   : > { %v3774_v32 = vpop.eup %3773  ;;  %v2750_v13 = vadd.f32 %v3385_v52, %v4912_v15  ;;  %v2720_v24 = vadd.f32 1.0, %v3772_v0  ;;  %v2723_v17 = vmul.f32 -0.5, %v3772_v0  ;;  %v2726_v28 = vand.u32 2147483647, %v3772_v0 }
 0x59b   : > { %v2713_v19 = vmul.f32 0.6931472, %v3774_v32 }
 0x59c   : > { %2758 = vst [vmem:[#allocation21 + $0x28] sm:$0xff] %v2750_v13  ;;  %3775 = vlog2.f32 %v2720_v24  ;;  %v2724_v21 = vadd.f32 1.0, %v2723_v17  ;;  %vm2727_vm7 = vcmp.lt.f32.partialorder %v2726_v28, 0.0004427343 }
 0x59d   : > { %v2719_v62 = vsel %vm2718_vm6, %v2716_v16, %v2713_v19 }
 0x59e   : > { %v2735_v6 = vadd.f32 %v2719_v62, %v2623_v20  ;;  %v2725_v15 = vmul.f32 %v3772_v0, %v2724_v21 }
 0x5a0   : > { %v3386_v22 = vadd.f32 -0.6931472, %v2735_v6 }
 0x5a2   : > { %v3776_v29 = vpop.eup %3775  ;;  %v2751_v61 = vadd.f32 %v3386_v22, %v4940_v58 }
 0x5a3   : > { %v2722_v30 = vmul.f32 0.6931472, %v3776_v29 }
 0x5a4   : > { %2759 = vst [vmem:[#allocation21 + $0x30] sm:$0xff] %v2751_v61 }
 0x5a5   : > { %v2728_v47 = vsel %vm2727_vm7, %v2725_v15, %v2722_v30 }
 0x5a6   : > { %v2736_v38 = vadd.f32 %v2728_v47, %v2624_v5 }
 0x5a8   : > { %v3387_v8 = vadd.f32 -0.6931472, %v2736_v38 }
 0x5aa   : > { %v2752_v33 = vadd.f32 %v3387_v8, %v4942_v11 }
 0x5ac   : > { %2760 = vst [vmem:[#allocation21 + $0x38] sm:$0xff] %v2752_v33 }
 0x5ad   : > { %3505 = dma.vmem_to_hbm [thread:$0]  (%p3545_p9), %s2767_s24, 1024, %s2769_s3, [#allocation10], %s4206_s15, %s4206_s15, %s4207_s0  }
 0x5ae   : > { %4168 = dma.done.wait (%p3545_p9), [#allocation10], 1024  }
 0x5af   : > { %4170 = vsyncadd (%p3545_p9), [#allocation10], 4294966272 }
 0x5b0 PF: > { %s5321_s29 = sld [smem:[#allocation28_spill]]  ;;  %s5324_s27 = smov %s4177_s28 }
 0x5b1   : > { %s5322_s10 = sld [smem:[#allocation27_spill]] }
 0x5b2   : > { %s5323_s5 = sld [smem:[#allocation29_spill]] }
 0x5b6   : > { %p43_p0 = scmp.ge.s32.totalorder %s5321_s29, 4  }
 0x5b7   : > { %s5325_s28 = smov %s5322_s10 }
 0x5b8   :  { %45 = sbr.rel (!%p43_p0) target bundleno = 32 (0x20), region = 277 }
 0x5bd   :  { %2785 = vsyncpa [#allocation9], 1 }
 0x5be   :  { %2787 = vsyncpa [#allocation9 + $0x1], 1 }
 0x5bf   :  { %2788 = vsyncpa [#allocation12], 1 }
 0x5c0   :  { %2789 = vsyncpa [#allocation10], 1 }
 0x5c1   :  { %2791 = vsyncpa [#allocation10 + $0x1], 1 }

</bundles_post_ra>
